<compile_context>
chip_gen: v5e
topology: v5e:2x2
jax: 0.10.0
libtpu: 0.0.40
codegen_flags: <defaults>
</compile_context>

<pallas_src>
import functools

import jax
import jax.numpy as jnp
from jax.experimental import pallas as pl
from jax.experimental.pallas import tpu as pltpu

IN_FEATS = 28 * 28     # 784
HIDDEN = 512
OUT_FEATS = 10
OUT_PAD = 128          # lane-dense output tile (cols 10..127 are zero)
MAX_TILE_B = 512       # ~8 MB/step VMEM incl. double-buffered x: safe everywhere


def mlp_kernel(x_ref, w1_ref, b1_ref, w2_ref, b2_ref, w3_ref, b3_ref, o_ref):
    """Fused 3-layer MLP for one (tb, 784) batch tile, all in VMEM."""
    # In-kernel bf16 cast (x arrives as f32 straight from HBM, no extra pass).
    x = x_ref[...].astype(jnp.bfloat16)

    # Layer 1: (tb, 784) @ (784, 512), f32 accumulation, +bias, ReLU
    h1 = jnp.dot(x, w1_ref[...], preferred_element_type=jnp.float32)
    h1 = jnp.maximum(h1 + b1_ref[...], 0.0)

    # Layer 2: (tb, 512) @ (512, 512)
    h2 = jnp.dot(h1.astype(jnp.bfloat16), w2_ref[...],
                 preferred_element_type=jnp.float32)
    h2 = jnp.maximum(h2 + b2_ref[...], 0.0)

    # Layer 3: (tb, 512) @ (512, 128)  (cols 10..127 of w3/b3 are zero padding)
    logits = jnp.dot(h2.astype(jnp.bfloat16), w3_ref[...],
                     preferred_element_type=jnp.float32)
    o_ref[...] = (logits + b3_ref[...]).astype(o_ref.dtype)


def _round_up(n, m):
    return ((n + m - 1) // m) * m


def _choose_tiling(B, max_tile=MAX_TILE_B):
    """Near-equal batch tiles, multiples of 8, <= max_tile, >=2 tiles for B>=16."""
    b8 = _round_up(B, 8)
    n_tiles = max(-(-b8 // max_tile), 2 if b8 >= 16 else 1)
    tb = _round_up(-(-b8 // n_tiles), 8)
    bp = n_tiles * tb
    return tb, bp, n_tiles


def prepare_params(params):
    """One-time weight prep: bf16 cast + lane padding (hoisted out of forward)."""
    w1, b1, w2, b2, w3, b3 = params
    w1_p = w1.astype(jnp.bfloat16)                                  # (784, 512)
    w2_p = w2.astype(jnp.bfloat16)                                  # (512, 512)
    w3_p = jnp.zeros((HIDDEN, OUT_PAD), jnp.bfloat16).at[:, :OUT_FEATS].set(
        w3.astype(jnp.bfloat16))                                    # (512, 128)
    b1_p = b1.reshape(1, HIDDEN).astype(jnp.float32)
    b2_p = b2.reshape(1, HIDDEN).astype(jnp.float32)
    b3_p = jnp.zeros((1, OUT_PAD), jnp.float32).at[:, :OUT_FEATS].set(
        b3.reshape(1, OUT_FEATS).astype(jnp.float32))
    return w1_p, b1_p, w2_p, b2_p, w3_p, b3_p


@functools.partial(jax.jit, static_argnames=("max_tile",))
def neural_network_forward(x, prepared, *, max_tile=MAX_TILE_B):
    """x: (B, 28, 28) float32, prepared = prepare_params(params).
    Returns logits (B, 10) float32."""
    w1_p, b1_p, w2_p, b2_p, w3_p, b3_p = prepared
    B = x.shape[0]

    # nn.Flatten; keep f32 (bf16 cast happens inside the kernel).
    x_flat = x.reshape(B, IN_FEATS).astype(jnp.float32)

    # Adaptive batch tiling; only the batch dim is (zero-)padded.
    tb, Bp, _ = _choose_tiling(B, max_tile)
    if Bp != B:
        x_flat = jnp.pad(x_flat, ((0, Bp - B), (0, 0)))

    grid = (Bp // tb,)

    # Weights/biases: constant block index -> VMEM-resident across grid steps.
    const = lambda a: pl.BlockSpec(a.shape, lambda i: (0,) * a.ndim)

    flops = 2 * Bp * (IN_FEATS * HIDDEN + HIDDEN * HIDDEN + HIDDEN * OUT_PAD)
    bytes_accessed = (
        Bp * IN_FEATS * 4                                   # x (f32)
        + (w1_p.size + w2_p.size + w3_p.size) * 2           # weights (bf16)
        + (b1_p.size + b2_p.size + b3_p.size) * 4           # biases (f32)
        + Bp * OUT_PAD * 4)                                 # output (f32)

    out = pl.pallas_call(
        mlp_kernel,
        out_shape=jax.ShapeDtypeStruct((Bp, OUT_PAD), jnp.float32),
        grid=grid,
        in_specs=[
            # x tile: last dim 784 == full array dim (legal without 128-align)
            pl.BlockSpec((tb, IN_FEATS), lambda i: (i, 0)),
            const(w1_p), const(b1_p),
            const(w2_p), const(b2_p),
            const(w3_p), const(b3_p),
        ],
        out_specs=pl.BlockSpec((tb, OUT_PAD), lambda i: (i, 0)),
        compiler_params=pltpu.CompilerParams(
            dimension_semantics=("parallel",)),             # megacore on v7x
        cost_estimate=pl.CostEstimate(flops=flops, transcendentals=0,
                                      bytes_accessed=bytes_accessed),
    )(x_flat, w1_p, b1_p, w2_p, b2_p, w3_p, b3_p)

    return out[:B, :OUT_FEATS]


def init_params(key):
    """Deterministic init mimicking nn.Linear defaults (U[-1/sqrt(fan_in), +])."""
    dims = [(IN_FEATS, HIDDEN), (HIDDEN, HIDDEN), (HIDDEN, OUT_FEATS)]
    params = []
    for (fan_in, fan_out) in dims:
        key, kw, kb = jax.random.split(key, 3)
        bound = 1.0 / jnp.sqrt(fan_in)
        # stored as (in, out): kernel computes x @ W
        w = jax.random.uniform(kw, (fan_in, fan_out), jnp.float32, -bound, bound)
        b = jax.random.uniform(kb, (fan_out,), jnp.float32, -bound, bound)
        params += [w, b]
    return tuple(params)


def reference_forward(x, params):
    """Pure-JAX reference using the same bf16 operand precision as the kernel."""
    w1, b1, w2, b2, w3, b3 = params
    bf = lambda a: a.astype(jnp.bfloat16).astype(jnp.float32)
    h = bf(x.reshape(x.shape[0], -1))
    h = jnp.maximum(jnp.dot(h, bf(w1), preferred_element_type=jnp.float32) + b1, 0.0)
    h = jnp.maximum(jnp.dot(bf(h), bf(w2), preferred_element_type=jnp.float32) + b2, 0.0)
    return jnp.dot(bf(h), bf(w3), preferred_element_type=jnp.float32) + b3


if __name__ == "__main__":
    key = jax.random.PRNGKey(0)
    key, kx = jax.random.split(key)

    B = 2  # small batch; PyTorch example uses (1, 28, 28)
    x = jax.random.uniform(kx, (B, 28, 28), jnp.float32)
    params = init_params(key)

    prepared = prepare_params(params)                 # one-time weight prep
    logits = neural_network_forward(x, prepared)
    logits = jax.block_until_ready(logits)

    ref = reference_forward(x, params)
    assert logits.shape == (B, OUT_FEATS)
    assert jnp.allclose(logits, ref, atol=1e-2, rtol=1e-2), "mismatch vs reference"

    print("KERNEL_OK")
</pallas_src>

<mosaic_0001>
module attributes {stable_mosaic.version = 11 : i64} {
  func.func @mlp_kernel(%arg0: i32, %arg1: memref<8x784xf32, #tpu.memory_space<vmem>>, %arg2: memref<784x512xbf16, #tpu.memory_space<vmem>>, %arg3: memref<1x512xf32, #tpu.memory_space<vmem>>, %arg4: memref<512x512xbf16, #tpu.memory_space<vmem>>, %arg5: memref<1x512xf32, #tpu.memory_space<vmem>>, %arg6: memref<512x128xbf16, #tpu.memory_space<vmem>>, %arg7: memref<1x128xf32, #tpu.memory_space<vmem>>, %arg8: memref<8x128xf32, #tpu.memory_space<vmem>>) attributes {dimension_semantics = [#tpu.dimension_semantics<parallel>], iteration_bounds = array<i64: 1>, scalar_prefetch = 0 : i64, scratch_operands = 0 : i64, tpu.core_type = #tpu.core_type<tc>, window_params = [{transform_indices = @transform_0, window_bounds = array<i64: 8, 784>}, {pipeline_mode = #tpu.pipeline_mode<synchronous>, transform_indices = @transform_1, window_bounds = array<i64: 784, 512>}, {pipeline_mode = #tpu.pipeline_mode<synchronous>, transform_indices = @transform_2, window_bounds = array<i64: 1, 512>}, {pipeline_mode = #tpu.pipeline_mode<synchronous>, transform_indices = @transform_3, window_bounds = array<i64: 512, 512>}, {pipeline_mode = #tpu.pipeline_mode<synchronous>, transform_indices = @transform_4, window_bounds = array<i64: 1, 512>}, {pipeline_mode = #tpu.pipeline_mode<synchronous>, transform_indices = @transform_5, window_bounds = array<i64: 512, 128>}, {pipeline_mode = #tpu.pipeline_mode<synchronous>, transform_indices = @transform_6, window_bounds = array<i64: 1, 128>}, {transform_indices = @transform_7, window_bounds = array<i64: 8, 128>}]} {
    %c0 = arith.constant 0 : index
    %c0_0 = arith.constant 0 : index
    %0 = vector.load %arg1[%c0, %c0_0] : memref<8x784xf32, #tpu.memory_space<vmem>>, vector<8x784xf32>
    %1 = arith.truncf %0 : vector<8x784xf32> to vector<8x784xbf16>
    %c0_1 = arith.constant 0 : index
    %c0_2 = arith.constant 0 : index
    %2 = vector.load %arg2[%c0_1, %c0_2] : memref<784x512xbf16, #tpu.memory_space<vmem>>, vector<784x512xbf16>
    %cst = arith.constant dense<0.000000e+00> : vector<8x512xf32>
    %3 = tpu.matmul %1, %2, %cst {dimension_numbers = #tpu.dot_dimension_numbers<[1], [0], [0], [1], [0, 0, 1, 1], [], []>} : vector<8x784xbf16>, vector<784x512xbf16>, vector<8x512xf32> -> vector<8x512xf32>
    %c0_3 = arith.constant 0 : index
    %c0_4 = arith.constant 0 : index
    %4 = vector.load %arg3[%c0_3, %c0_4] : memref<1x512xf32, #tpu.memory_space<vmem>>, vector<1x512xf32>
    %5 = vector.broadcast %4 : vector<1x512xf32> to vector<8x512xf32>
    %6 = arith.addf %3, %5 : vector<8x512xf32>
    %cst_5 = arith.constant 0.000000e+00 : f32
    %7 = vector.broadcast %cst_5 : f32 to vector<8x512xf32>
    %8 = arith.maximumf %6, %7 : vector<8x512xf32>
    %9 = arith.truncf %8 : vector<8x512xf32> to vector<8x512xbf16>
    %c0_6 = arith.constant 0 : index
    %c0_7 = arith.constant 0 : index
    %10 = vector.load %arg4[%c0_6, %c0_7] : memref<512x512xbf16, #tpu.memory_space<vmem>>, vector<512x512xbf16>
    %cst_8 = arith.constant dense<0.000000e+00> : vector<8x512xf32>
    %11 = tpu.matmul %9, %10, %cst_8 {dimension_numbers = #tpu.dot_dimension_numbers<[1], [0], [0], [1], [0, 0, 1, 1], [], []>} : vector<8x512xbf16>, vector<512x512xbf16>, vector<8x512xf32> -> vector<8x512xf32>
    %c0_9 = arith.constant 0 : index
    %c0_10 = arith.constant 0 : index
    %12 = vector.load %arg5[%c0_9, %c0_10] : memref<1x512xf32, #tpu.memory_space<vmem>>, vector<1x512xf32>
    %13 = vector.broadcast %12 : vector<1x512xf32> to vector<8x512xf32>
    %14 = arith.addf %11, %13 : vector<8x512xf32>
    %cst_11 = arith.constant 0.000000e+00 : f32
    %15 = vector.broadcast %cst_11 : f32 to vector<8x512xf32>
    %16 = arith.maximumf %14, %15 : vector<8x512xf32>
    %17 = arith.truncf %16 : vector<8x512xf32> to vector<8x512xbf16>
    %c0_12 = arith.constant 0 : index
    %c0_13 = arith.constant 0 : index
    %18 = vector.load %arg6[%c0_12, %c0_13] : memref<512x128xbf16, #tpu.memory_space<vmem>>, vector<512x128xbf16>
    %cst_14 = arith.constant dense<0.000000e+00> : vector<8x128xf32>
    %19 = tpu.matmul %17, %18, %cst_14 {dimension_numbers = #tpu.dot_dimension_numbers<[1], [0], [0], [1], [0, 0, 1, 1], [], []>} : vector<8x512xbf16>, vector<512x128xbf16>, vector<8x128xf32> -> vector<8x128xf32>
    %c0_15 = arith.constant 0 : index
    %c0_16 = arith.constant 0 : index
    %20 = vector.load %arg7[%c0_15, %c0_16] : memref<1x128xf32, #tpu.memory_space<vmem>>, vector<1x128xf32>
    %21 = vector.broadcast %20 : vector<1x128xf32> to vector<8x128xf32>
    %22 = arith.addf %19, %21 : vector<8x128xf32>
    %c0_17 = arith.constant 0 : index
    %c0_18 = arith.constant 0 : index
    %23 = vector.load %arg8[%c0_17, %c0_18] : memref<8x128xf32, #tpu.memory_space<vmem>>, vector<8x128xf32>
    tpu.vector_store %arg8[%c0_17, %c0_18], %22 {strides = array<i32>} : memref<8x128xf32, #tpu.memory_space<vmem>>, vector<8x128xf32>,
    return
  }
  func.func @transform_0(%arg0: i32) -> (i32, i32) {
    %c0_i32 = arith.constant 0 : i32
    %c0_i32_0 = arith.constant 0 : i32
    return %arg0, %c0_i32 : i32, i32
  }
  func.func @transform_1(%arg0: i32) -> (i32, i32) {
    %c0_i32 = arith.constant 0 : i32
    %c0_i32_0 = arith.constant 0 : i32
    %c0_i32_1 = arith.constant 0 : i32
    return %c0_i32, %c0_i32_0 : i32, i32
  }
  func.func @transform_2(%arg0: i32) -> (i32, i32) {
    %c0_i32 = arith.constant 0 : i32
    %c0_i32_0 = arith.constant 0 : i32
    %c0_i32_1 = arith.constant 0 : i32
    return %c0_i32, %c0_i32_0 : i32, i32
  }
  func.func @transform_3(%arg0: i32) -> (i32, i32) {
    %c0_i32 = arith.constant 0 : i32
    %c0_i32_0 = arith.constant 0 : i32
    %c0_i32_1 = arith.constant 0 : i32
    return %c0_i32, %c0_i32_0 : i32, i32
  }
  func.func @transform_4(%arg0: i32) -> (i32, i32) {
    %c0_i32 = arith.constant 0 : i32
    %c0_i32_0 = arith.constant 0 : i32
    %c0_i32_1 = arith.constant 0 : i32
    return %c0_i32, %c0_i32_0 : i32, i32
  }
  func.func @transform_5(%arg0: i32) -> (i32, i32) {
    %c0_i32 = arith.constant 0 : i32
    %c0_i32_0 = arith.constant 0 : i32
    %c0_i32_1 = arith.constant 0 : i32
    return %c0_i32, %c0_i32_0 : i32, i32
  }
  func.func @transform_6(%arg0: i32) -> (i32, i32) {
    %c0_i32 = arith.constant 0 : i32
    %c0_i32_0 = arith.constant 0 : i32
    %c0_i32_1 = arith.constant 0 : i32
    return %c0_i32, %c0_i32_0 : i32, i32
  }
  func.func @transform_7(%arg0: i32) -> (i32, i32) {
    %c0_i32 = arith.constant 0 : i32
    %c0_i32_0 = arith.constant 0 : i32
    return %arg0, %c0_i32 : i32, i32
  }
}

</mosaic_0001>

<bundles_post_ra>
// kernel: neural_network_forward.1
= control target key start
LH: loop header
LB: loop body
LE: loop exit
PB: predicated region body
PF: predicated region fallthrough
CT: control target
= control target key end

     0   :  { %12 = vsyncpa [#allocation3], 0  ;;  %s5101_s0 = inlined_call_operand.vmem [shape: f32[8,784], index: 0, kind: input, shape index: {}]   ;;  %s5102_s1 = inlined_call_operand.hbm [shape: bf16[784,512], index: 1, kind: input, shape index: {}]   ;;  %s5103_s2 = inlined_call_operand.vmem [shape: f32[1,512], index: 2, kind: input, shape index: {}]   ;;  %s5104_s3 = inlined_call_operand.hbm [shape: bf16[512,512], index: 3, kind: input, shape index: {}]   ;;  %s5105_s4 = inlined_call_operand.vmem [shape: f32[1,512], index: 4, kind: input, shape index: {}]   ;;  %s5106_s5 = inlined_call_operand.vmem [shape: bf16[512,128], index: 5, kind: input, shape index: {}]   ;;  %s5107_s6 = inlined_call_operand.vmem [shape: f32[1,128], index: 6, kind: input, shape index: {}]   ;;  %s5108_s7 = inlined_call_operand.vmem [shape: f32[8,128], index: 7, kind: output, shape index: {}]  }
   0x1   :  { %s20_s26 = sshll.u32 %s5102_s1, 4  ;;  %s21_s26 = int_to_ptr.hbm [resolvable:$true] %s20_s26 }
   0x2   :  { %13 = vsyncpa [#allocation5], 0  ;;  %s4789_s27 = smov [#allocation2]   ;;  %s35_s8 = sshll.u32 %s5104_s3, 4  ;;  %s36_s8 = int_to_ptr.hbm [resolvable:$true] %s35_s8 }
   0x3   :  { %s22_s28 = sshll.u32 %s4789_s27, 4  ;;  %s4790_s9 = smov 256   ;;  %s23_s28 = int_to_ptr.vmem [resolvable:$true] %s22_s28 }
   0x4   :  { %s4791_s10 = smov 16   ;;  %s4792_s11 = smov [#allocation4]  }
   0x5   :  { %28 = dma.hbm_to_vmem [thread:$0]  %s21_s26, 25088, %s23_s28, [#allocation3], %s4790_s9, %s4790_s9, %s4791_s10  }
   0x6   :  { %s37_s12 = sshll.u32 %s4792_s11, 4  ;;  %s38_s12 = int_to_ptr.vmem [resolvable:$true] %s37_s12 }
   0x7   :  { %43 = dma.hbm_to_vmem [thread:$0]  %s36_s8, 16384, %s38_s12, [#allocation5], %s4790_s9, %s4790_s9, %s4791_s10  }
   0x8   :  { %4785 = dma.done.wait [#allocation3], 25088  }
   0x9   :  { %4786 = vsyncadd [#allocation3], 4294942208 }
   0xa   :  { %4787 = dma.done.wait [#allocation5], 16384  }
   0xb   :  { %4788 = vsyncadd [#allocation5], 4294950912  ;;  %v3062_v0 = vld [vmem:[#allocation2 + $0xe0] sm:$0xf]  ;;  %v4406_v1 = vld [vmem:[#allocation2 + $0xec] sm:$0xf0] }
   0xc   :  { %v3190_v2 = vld [vmem:[#allocation2 + $0x1e0] sm:$0xf]  ;;  %v3063_v3 = vor.u32 %v4406_v1, %v3062_v0  ;;  %v4438_v4 = vld [vmem:[#allocation2 + $0x1ec] sm:$0xf0]  ;;  %vm1259_vm0 = vcmask 130048  }
   0xd   :  { %v3318_v5 = vld [vmem:[#allocation2 + $0x2e0] sm:$0xf]  ;;  %v4470_v6 = vld [vmem:[#allocation2 + $0x2ec] sm:$0xf0]  ;;  %v3191_v7 = vor.u32 %v4438_v4, %v3190_v2 }
   0xe   :  { %v3319_v8 = vor.u32 %v4470_v6, %v3318_v5  ;;  %v3446_v9 = vld [vmem:[#allocation2 + $0x3e0] sm:$0xf]  ;;  %v4502_v10 = vld [vmem:[#allocation2 + $0x3ec] sm:$0xf0]  ;;  %1263 = vmatpush.bf16.msra.mxu0 %v3063_v3 }
   0xf   :  { %v3046_v11 = vld [vmem:[#allocation2 + $0xc0] sm:$0xf]  ;;  %v3447_v12 = vor.u32 %v4502_v10, %v3446_v9  ;;  %v4402_v13 = vld [vmem:[#allocation2 + $0xcc] sm:$0xf0]  ;;  %1276 = vmatpush.bf16.msra.mxu1 %v3191_v7 }
  0x10   :  { %v3174_v14 = vld [vmem:[#allocation2 + $0x1c0] sm:$0xf]  ;;  %v4434_v15 = vld [vmem:[#allocation2 + $0x1cc] sm:$0xf0]  ;;  %1289 = vmatpush.bf16.msra.mxu2 %v3319_v8  ;;  %v3047_v16 = vor.u32 %v4402_v13, %v3046_v11 }
  0x11   :  { %v3175_v17 = vor.u32 %v4434_v15, %v3174_v14  ;;  %v3302_v18 = vld [vmem:[#allocation2 + $0x2c0] sm:$0xf]  ;;  %v4466_v19 = vld [vmem:[#allocation2 + $0x2cc] sm:$0xf0]  ;;  %1302 = vmatpush.bf16.msra.mxu3 %v3447_v12 }
  0x12   :  { %v3430_v20 = vld [vmem:[#allocation2 + $0x3c0] sm:$0xf]  ;;  %v3303_v21 = vor.u32 %v4466_v19, %v3302_v18  ;;  %v4498_v22 = vld [vmem:[#allocation2 + $0x3cc] sm:$0xf0]  ;;  %1264 = vmatpush.bf16.msra.mxu0 %v3047_v16 }
  0x13   :  { %v3030_v23 = vld [vmem:[#allocation2 + $0xa0] sm:$0xf]  ;;  %v4398_v24 = vld [vmem:[#allocation2 + $0xac] sm:$0xf0]  ;;  %v3431_v25 = vor.u32 %v4498_v22, %v3430_v20  ;;  %1277 = vmatpush.bf16.msra.mxu1 %v3175_v17 }
  0x14   :  { %v3158_v26 = vld [vmem:[#allocation2 + $0x1a0] sm:$0xf]  ;;  %v4430_v27 = vld [vmem:[#allocation2 + $0x1ac] sm:$0xf0]  ;;  %v3031_v29 = vor.u32 %v4398_v24, %v3030_v23  ;;  %1290 = vmatpush.bf16.msra.mxu2 %v3303_v21 }
  0x15   :  { %v3286_v28 = vld [vmem:[#allocation2 + $0x2a0] sm:$0xf]  ;;  %v4462_v30 = vld [vmem:[#allocation2 + $0x2ac] sm:$0xf0]  ;;  %v3159_v33 = vor.u32 %v4430_v27, %v3158_v26  ;;  %1303 = vmatpush.bf16.msra.mxu3 %v3431_v25 }
  0x16   :  { %v3414_v31 = vld [vmem:[#allocation2 + $0x3a0] sm:$0xf]  ;;  %v4494_v32 = vld [vmem:[#allocation2 + $0x3ac] sm:$0xf0]  ;;  %v3287_v34 = vor.u32 %v4462_v30, %v3286_v28  ;;  %1265 = vmatpush.bf16.msra.mxu0 %v3031_v29 }
  0x17   :  { %v3014_v35 = vld [vmem:[#allocation2 + $0x80] sm:$0xf]  ;;  %v4394_v36 = vld [vmem:[#allocation2 + $0x8c] sm:$0xf0]  ;;  %v3415_v38 = vor.u32 %v4494_v32, %v3414_v31  ;;  %1278 = vmatpush.bf16.msra.mxu1 %v3159_v33  ;;  %v4404_v33 = vld [vmem:[#allocation2 + $0xe4] sm:$0xf] }
  0x18   :  { %v3142_v37 = vld [vmem:[#allocation2 + $0x180] sm:$0xf]  ;;  %v4426_v39 = vld [vmem:[#allocation2 + $0x18c] sm:$0xf0]  ;;  %v3015_v44 = vor.u32 %v4394_v36, %v3014_v35  ;;  %1291 = vmatpush.bf16.msra.mxu2 %v3287_v34  ;;  %v3064_v34 = vld [vmem:[#allocation2 + $0xf0] sm:$0xf0] }
  0x19   :  { %v3270_v40 = vld [vmem:[#allocation2 + $0x280] sm:$0xf]  ;;  %v4458_v41 = vld [vmem:[#allocation2 + $0x28c] sm:$0xf0]  ;;  %v3143_v45 = vor.u32 %v4426_v39, %v3142_v37  ;;  %1304 = vmatpush.bf16.msra.mxu3 %v3415_v38 }
  0x1a   :  { %v3398_v42 = vld [vmem:[#allocation2 + $0x380] sm:$0xf]  ;;  %v4490_v43 = vld [vmem:[#allocation2 + $0x38c] sm:$0xf0]  ;;  %v3271_v46 = vor.u32 %v4458_v41, %v3270_v40  ;;  %1266 = vmatpush.bf16.msra.mxu0 %v3015_v44  ;;  %v3192_v44 = vld [vmem:[#allocation2 + $0x1f0] sm:$0xf0] }
  0x1b   :  { %v2998_v47 = vld [vmem:[#allocation2 + $0x60] sm:$0xf]  ;;  %v4390_v48 = vld [vmem:[#allocation2 + $0x6c] sm:$0xf0]  ;;  %v3399_v50 = vor.u32 %v4490_v43, %v3398_v42  ;;  %1279 = vmatpush.bf16.msra.mxu1 %v3143_v45  ;;  %v4436_v43 = vld [vmem:[#allocation2 + $0x1e4] sm:$0xf] }
  0x1c   :  { %v3126_v49 = vld [vmem:[#allocation2 + $0x160] sm:$0xf]  ;;  %v4422_v51 = vld [vmem:[#allocation2 + $0x16c] sm:$0xf0]  ;;  %v2999_v56 = vor.u32 %v4390_v48, %v2998_v47  ;;  %1292 = vmatpush.bf16.msra.mxu2 %v3271_v46  ;;  %v62_v45 = vld [vmem:[%s5101_s0 + $0x18] sm:$0xff]  ;;  %v3067_v47 = vor.u32 %v4404_v33, %v3064_v34 }
  0x1d   :  { %v3254_v52 = vld [vmem:[#allocation2 + $0x260] sm:$0xf]  ;;  %v4454_v53 = vld [vmem:[#allocation2 + $0x26c] sm:$0xf0]  ;;  %v3127_v57 = vor.u32 %v4422_v51, %v3126_v49  ;;  %1305 = vmatpush.bf16.msra.mxu3 %v3399_v50 }
  0x1e   :  { %v3382_v54 = vld [vmem:[#allocation2 + $0x360] sm:$0xf]  ;;  %v4486_v55 = vld [vmem:[#allocation2 + $0x36c] sm:$0xf0]  ;;  %v3255_v58 = vor.u32 %v4454_v53, %v3254_v52  ;;  %1267 = vmatpush.bf16.msra.mxu0 %v2999_v56  ;;  %v4400_v53 = vld [vmem:[#allocation2 + $0xc4] sm:$0xf] }
  0x1f   :  { %v2982_v59 = vld [vmem:[#allocation2 + $0x40] sm:$0xf]  ;;  %v4386_v60 = vld [vmem:[#allocation2 + $0x4c] sm:$0xf0]  ;;  %v3383_v62 = vor.u32 %v4486_v55, %v3382_v54  ;;  %1280 = vmatpush.bf16.msra.mxu1 %v3127_v57  ;;  %v3048_v54 = vld [vmem:[#allocation2 + $0xd0] sm:$0xf0]  ;;  %v4852_v57 = vpack.c.bf16 %v62_v45, %v62_v45 }
  0x20   :  { %v3110_v61 = vld [vmem:[#allocation2 + $0x140] sm:$0xf]  ;;  %v4418_v63 = vld [vmem:[#allocation2 + $0x14c] sm:$0xf0]  ;;  %v2983_v4 = vor.u32 %v4386_v60, %v2982_v59  ;;  %1293 = vmatpush.bf16.msra.mxu2 %v3255_v58  ;;  %v60_v58 = vld [vmem:[%s5101_s0 + $0x8] sm:$0xff]  ;;  %v3195_v59 = vor.u32 %v4436_v43, %v3192_v44 }
  0x21   :  { %v3238_v0 = vld [vmem:[#allocation2 + $0x240] sm:$0xf]  ;;  %v4450_v1 = vld [vmem:[#allocation2 + $0x24c] sm:$0xf0]  ;;  %v3111_v5 = vor.u32 %v4418_v63, %v3110_v61  ;;  %1306 = vmatpush.bf16.msra.mxu3 %v3383_v62  ;;  %v4432_v61 = vld [vmem:[#allocation2 + $0x1c4] sm:$0xf] }
  0x22   :  { %v3366_v2 = vld [vmem:[#allocation2 + $0x340] sm:$0xf]  ;;  %v4482_v3 = vld [vmem:[#allocation2 + $0x34c] sm:$0xf0]  ;;  %v3239_v6 = vor.u32 %v4450_v1, %v3238_v0  ;;  %1268 = vmatpush.bf16.msra.mxu0 %v2983_v4  ;;  %v3176_v62 = vld [vmem:[#allocation2 + $0x1d0] sm:$0xf0]  ;;  %v3051_v0 = vor.u32 %v4400_v53, %v3048_v54 }
  0x23   :  { %v2966_v7 = vld [vmem:[#allocation2 + $0x20] sm:$0xf]  ;;  %v4382_v8 = vld [vmem:[#allocation2 + $0x2c] sm:$0xf0]  ;;  %v3367_v10 = vor.u32 %v4482_v3, %v3366_v2  ;;  %1281 = vmatpush.bf16.msra.mxu1 %v3111_v5  ;;  %v4396_v5 = vld [vmem:[#allocation2 + $0xa4] sm:$0xf] }
  0x24   :  { %v3094_v9 = vld [vmem:[#allocation2 + $0x120] sm:$0xf]  ;;  %v4414_v11 = vld [vmem:[#allocation2 + $0x12c] sm:$0xf0]  ;;  %v2967_v16 = vor.u32 %v4382_v8, %v2966_v7  ;;  %1294 = vmatpush.bf16.msra.mxu2 %v3239_v6  ;;  %v3032_v6 = vld [vmem:[#allocation2 + $0xb0] sm:$0xf0]  ;;  %v4859_v7 = vpack.c.bf16 %v60_v58, %v60_v58  ;;  %v3179_v8 = vor.u32 %v4432_v61, %v3176_v62 }
  0x25   :  { %v3222_v12 = vld [vmem:[#allocation2 + $0x220] sm:$0xf]  ;;  %v4446_v13 = vld [vmem:[#allocation2 + $0x22c] sm:$0xf0]  ;;  %v3095_v20 = vor.u32 %v4414_v11, %v3094_v9  ;;  %1307 = vmatpush.bf16.msra.mxu3 %v3367_v10  ;;  %v4428_v10 = vld [vmem:[#allocation2 + $0x1a4] sm:$0xf] }
  0x26   :  { %v3350_v14 = vld [vmem:[#allocation2 + $0x320] sm:$0xf]  ;;  %v4478_v15 = vld [vmem:[#allocation2 + $0x32c] sm:$0xf0]  ;;  %v3223_v21 = vor.u32 %v4446_v13, %v3222_v12  ;;  %1269 = vmatpush.bf16.msra.mxu0 %v2967_v16  ;;  %v3160_v11 = vld [vmem:[#allocation2 + $0x1b0] sm:$0xf0]  ;;  %v3035_v13 = vor.u32 %v4396_v5, %v3032_v6 }
  0x27   :  { %v2950_v17 = vld [vmem:[#allocation2] sm:$0xf]  ;;  %v4378_v18 = vld [vmem:[#allocation2 + $0xc] sm:$0xf0]  ;;  %v3351_v25 = vor.u32 %v4478_v15, %v3350_v14  ;;  %1282 = vmatpush.bf16.msra.mxu1 %v3095_v20  ;;  %v3163_v20 = vor.u32 %v4428_v10, %v3160_v11  ;;  %v4384_v43 = vld [vmem:[#allocation2 + $0x44] sm:$0xf] }
  0x28   :  { %v3078_v19 = vld [vmem:[#allocation2 + $0x100] sm:$0xf]  ;;  %v4410_v22 = vld [vmem:[#allocation2 + $0x10c] sm:$0xf0]  ;;  %v2951_v32 = vor.u32 %v4378_v18, %v2950_v17  ;;  %1295 = vmatpush.bf16.msra.mxu2 %v3223_v21  ;;  %v4392_v18 = vld [vmem:[#allocation2 + $0x84] sm:$0xf] }
  0x29   :  { %v3206_v23 = vld [vmem:[#allocation2 + $0x200] sm:$0xf]  ;;  %v4442_v24 = vld [vmem:[#allocation2 + $0x20c] sm:$0xf0]  ;;  %v3079_v36 = vor.u32 %v4410_v22, %v3078_v19  ;;  %1308 = vmatpush.bf16.msra.mxu3 %v3351_v25  ;;  %v3016_v19 = vld [vmem:[#allocation2 + $0x90] sm:$0xf0] }
  0x2a   :  { %v3334_v26 = vld [vmem:[#allocation2 + $0x300] sm:$0xf]  ;;  %v4474_v27 = vld [vmem:[#allocation2 + $0x30c] sm:$0xf0]  ;;  %v3207_v37 = vor.u32 %v4442_v24, %v3206_v23  ;;  %1270 = vmatpush.bf16.msra.mxu0 %v2951_v32  ;;  %v4424_v22 = vld [vmem:[#allocation2 + $0x184] sm:$0xf]  ;;  %v3019_v25 = vor.u32 %v4392_v18, %v3016_v19 }
  0x2b   :  { %v3574_v28 = vld [vmem:[#allocation2 + $0x4e0] sm:$0xf]  ;;  %v4534_v29 = vld [vmem:[#allocation2 + $0x4ec] sm:$0xf0]  ;;  %v3335_v41 = vor.u32 %v4474_v27, %v3334_v26  ;;  %1283 = vmatpush.bf16.msra.mxu1 %v3079_v36  ;;  %v3144_v23 = vld [vmem:[#allocation2 + $0x190] sm:$0xf0] }
  0x2c   :  { %v3702_v30 = vld [vmem:[#allocation2 + $0x5e0] sm:$0xf]  ;;  %v4566_v31 = vld [vmem:[#allocation2 + $0x5ec] sm:$0xf0]  ;;  %v3575_v42 = vor.u32 %v4534_v29, %v3574_v28  ;;  %1296 = vmatpush.bf16.msra.mxu2 %v3207_v37  ;;  %v3147_v33 = vor.u32 %v4424_v22, %v3144_v23  ;;  %v3128_v36 = vld [vmem:[#allocation2 + $0x170] sm:$0xf0] }
  0x2d   :  { %v61_v35 = vld [vmem:[%s5101_s0 + $0x10] sm:$0xff]  ;;  %v3718_v38 = vld [vmem:[#allocation2 + $0x600] sm:$0xf]  ;;  %v3703_v46 = vor.u32 %v4566_v31, %v3702_v30  ;;  %1309 = vmatpush.bf16.msra.mxu3 %v3335_v41  ;;  %v4388_v30 = vld [vmem:[#allocation2 + $0x64] sm:$0xf] }
  0x2e   :  { %v4570_v39 = vld [vmem:[#allocation2 + $0x60c] sm:$0xf0]  ;;  %v59_v40 = vld [vmem:[%s5101_s0] sm:$0xff]  ;;  %v4848_v51 = vpack.c.bf16 %v61_v35, %v61_v35  ;;  %1315 = vmatpush.bf16.msrb.mxu0 %v3575_v42  ;;  %1284 = vmatmul.bf16.vlgmr.msra.gmra.mxu1 %v4859_v7  ;;  %v3000_v31 = vld [vmem:[#allocation2 + $0x70] sm:$0xf0] }
  0x2f   :  { %v3558_v48 = vld [vmem:[#allocation2 + $0x4c0] sm:$0xf]  ;;  %v4530_v49 = vld [vmem:[#allocation2 + $0x4cc] sm:$0xf0]  ;;  %v4850_v55 = vpack.c.bf16 %v59_v40, %v59_v40  ;;  %v3719_v56 = vor.u32 %v4570_v39, %v3718_v38  ;;  %1328 = vmatpush.bf16.msrb.mxu1 %v3703_v46  ;;  %v4420_v35 = vld [vmem:[#allocation2 + $0x164] sm:$0xf]  ;;  %v3003_v38 = vor.u32 %v4388_v30, %v3000_v31 }
  0x30   :  { %v3686_v50 = vld [vmem:[#allocation2 + $0x5c0] sm:$0xf]  ;;  %v4562_v52 = vld [vmem:[#allocation2 + $0x5cc] sm:$0xf0]  ;;  %v3559_v60 = vor.u32 %v4530_v49, %v3558_v48  ;;  %1297 = vmatmul.bf16.vlgmr.msra.gmra.mxu2 %v4848_v51  ;;  %1310 = vmatmul.bf16.vlgmr.msra.gmra.mxu3 %v4852_v57  ;;  %v2984_v44 = vld [vmem:[#allocation2 + $0x50] sm:$0xf0]  ;;  %v3131_v46 = vor.u32 %v4420_v35, %v3128_v36 }
  0x31   :  { %1354 = vmatpush.bf16.msrb.mxu3 %v3067_v47  ;;  %v3687_v63 = vor.u32 %v4562_v52, %v3686_v50  ;;  %v3542_v1 = vld [vmem:[#allocation2 + $0x4a0] sm:$0xf]  ;;  %v4526_v2 = vld [vmem:[#allocation2 + $0x4ac] sm:$0xf0]  ;;  %1271 = vmatmul.bf16.vlgmr.msra.gmra.mxu0 %v4850_v55  ;;  %v4416_v48 = vld [vmem:[#allocation2 + $0x144] sm:$0xf]  ;;  %v2987_v52 = vor.u32 %v4384_v43, %v2984_v44 }
  0x32   :  { %v3670_v3 = vld [vmem:[#allocation2 + $0x5a0] sm:$0xf]  ;;  %v4558_v4 = vld [vmem:[#allocation2 + $0x5ac] sm:$0xf0]  ;;  %1348 = vmatpush.bf16.msrb.mxu2 %v3719_v56  ;;  %1316 = vmatpush.bf16.msrb.mxu0 %v3559_v60  ;;  %v3543_v9 = vor.u32 %v4526_v2, %v3542_v1  ;;  %v3112_v49 = vld [vmem:[#allocation2 + $0x150] sm:$0xf0] }
  0x33   :  { %1329 = vmatpush.bf16.msrb.mxu1 %v3687_v63  ;;  %v3671_v12 = vor.u32 %v4558_v4, %v3670_v3  ;;  %v3526_v14 = vld [vmem:[#allocation2 + $0x480] sm:$0xf]  ;;  %v4522_v15 = vld [vmem:[#allocation2 + $0x48c] sm:$0xf0]  ;;  %v2968_v60 = vld [vmem:[#allocation2 + $0x30] sm:$0xf0]  ;;  %v3115_v61 = vor.u32 %v4416_v48, %v3112_v49 }
  0x34   :  { %v3654_v16 = vld [vmem:[#allocation2 + $0x580] sm:$0xf]  ;;  %v4554_v17 = vld [vmem:[#allocation2 + $0x58c] sm:$0xf0]  ;;  %v3527_v21 = vor.u32 %v4522_v15, %v3526_v14  ;;  %v4412_v63 = vld [vmem:[#allocation2 + $0x124] sm:$0xf] }
  0x35   :  { %1355 = vmatpush.bf16.msrb.mxu3 %v3051_v0  ;;  %v3655_v24 = vor.u32 %v4554_v17, %v3654_v16  ;;  %v3510_v26 = vld [vmem:[#allocation2 + $0x460] sm:$0xf]  ;;  %v4518_v27 = vld [vmem:[#allocation2 + $0x46c] sm:$0xf0]  ;;  %v3096_v0 = vld [vmem:[#allocation2 + $0x130] sm:$0xf0] }
  0x36   :  { %1367 = vmatpush.bf16.msra.mxu2 %v3195_v59  ;;  %1317 = vmatpush.bf16.msrb.mxu0 %v3543_v9  ;;  %v3638_v28 = vld [vmem:[#allocation2 + $0x560] sm:$0xf]  ;;  %v4550_v29 = vld [vmem:[#allocation2 + $0x56c] sm:$0xf0]  ;;  %v3511_v34 = vor.u32 %v4518_v27, %v3510_v26  ;;  %v4380_v59 = vld [vmem:[#allocation2 + $0x24] sm:$0xf]  ;;  %v3099_v14 = vor.u32 %v4412_v63, %v3096_v0 }
  0x37   :  { %1330 = vmatpush.bf16.msrb.mxu1 %v3671_v12  ;;  %v65_v32 = vld [vmem:[%s5101_s0 + $0x30] sm:$0xff]  ;;  %v3639_v37 = vor.u32 %v4550_v29, %v3638_v28  ;;  %v3494_v39 = vld [vmem:[#allocation2 + $0x440] sm:$0xf]  ;;  %v2971_v3 = vor.u32 %v4380_v59, %v2968_v60  ;;  %v4468_v10 = vld [vmem:[#allocation2 + $0x2e4] sm:$0xf] }
  0x38   :  { %v4514_v40 = vld [vmem:[#allocation2 + $0x44c] sm:$0xf0]  ;;  %v3622_v41 = vld [vmem:[#allocation2 + $0x540] sm:$0xf]  ;;  %v4866_v45 = vpack.c.bf16 %v65_v32, %v65_v32  ;;  %v2952_v9 = vld [vmem:[#allocation2 + $0x10] sm:$0xf0] }
  0x39   :  { %1356 = vmatpush.bf16.msrb.mxu3 %v3035_v13  ;;  %v4546_v42 = vld [vmem:[#allocation2 + $0x54c] sm:$0xf0]  ;;  %v3495_v47 = vor.u32 %v4514_v40, %v3494_v39  ;;  %v3478_v53 = vld [vmem:[#allocation2 + $0x420] sm:$0xf]  ;;  %v3320_v11 = vld [vmem:[#allocation2 + $0x2f0] sm:$0xf0] }
  0x3a   :  { %1368 = vmatpush.bf16.msra.mxu2 %v3179_v8  ;;  %1318 = vmatpush.bf16.msrb.mxu0 %v3527_v21  ;;  %v3623_v50 = vor.u32 %v4546_v42, %v3622_v41  ;;  %v4510_v54 = vld [vmem:[#allocation2 + $0x42c] sm:$0xf0]  ;;  %v3606_v56 = vld [vmem:[#allocation2 + $0x520] sm:$0xf]  ;;  %v4376_v8 = vld [vmem:[#allocation2 + $0x4] sm:$0xf] }
  0x3b   :  { %1331 = vmatpush.bf16.msrb.mxu1 %v3655_v24  ;;  %v4542_v58 = vld [vmem:[#allocation2 + $0x52c] sm:$0xf0]  ;;  %v3479_v62 = vor.u32 %v4510_v54, %v3478_v53  ;;  %v3462_v1 = vld [vmem:[#allocation2 + $0x400] sm:$0xf]  ;;  %v4500_v12 = vld [vmem:[#allocation2 + $0x3e4] sm:$0xf]  ;;  %v3323_v24 = vor.u32 %v4468_v10, %v3320_v11 }
  0x3c   :  { %v3607_v2 = vor.u32 %v4542_v58, %v3606_v56  ;;  %v4506_v4 = vld [vmem:[#allocation2 + $0x40c] sm:$0xf0]  ;;  %v3590_v5 = vld [vmem:[#allocation2 + $0x500] sm:$0xf]  ;;  %v3448_v13 = vld [vmem:[#allocation2 + $0x3f0] sm:$0xf0] }
  0x3d   :  { %1357 = vmatpush.bf16.msrb.mxu3 %v3019_v25  ;;  %v4538_v6 = vld [vmem:[#allocation2 + $0x50c] sm:$0xf0]  ;;  %v3463_v15 = vor.u32 %v4506_v4, %v3462_v1  ;;  %v4532_v16 = vld [vmem:[#allocation2 + $0x4e4] sm:$0xf]  ;;  %v3576_v17 = vld [vmem:[#allocation2 + $0x4f0] sm:$0xf0]  ;;  %v3451_v25 = vor.u32 %v4500_v12, %v3448_v13 }
  0x3e   :  { %1369 = vmatpush.bf16.msra.mxu2 %v3163_v20  ;;  %1319 = vmatpush.bf16.msrb.mxu0 %v3511_v34  ;;  %v63_v18 = vld [vmem:[%s5101_s0 + $0x20] sm:$0xff]  ;;  %v3591_v19 = vor.u32 %v4538_v6, %v3590_v5  ;;  %v2955_v20 = vor.u32 %v4376_v8, %v2952_v9  ;;  %v3080_v22 = vld [vmem:[#allocation2 + $0x110] sm:$0xf0]  ;;  %v64_v23 = vld [vmem:[%s5101_s0 + $0x28] sm:$0xff]  ;;  %v3579_v29 = vor.u32 %v4532_v16, %v3576_v17 }
  0x3f   :  { %1332 = vmatpush.bf16.msrb.mxu1 %v3639_v37  ;;  %v4408_v21 = vld [vmem:[#allocation2 + $0x104] sm:$0xf]  ;;  %v3704_v27 = vld [vmem:[#allocation2 + $0x5f0] sm:$0xf0]  ;;  %v4876_v30 = vpack.c.bf16 %v63_v18, %v63_v18  ;;  %v4878_v35 = vpack.c.bf16 %v64_v23, %v64_v23 }
  0x40   :  { %3732 = vmatmul.msk.bf16.vlgmr.msrb.gmra.mxu2 %vm1259_vm0, %v4866_v45  ;;  %v4564_v26 = vld [vmem:[#allocation2 + $0x5e4] sm:$0xf]  ;;  %v3304_v31 = vld [vmem:[#allocation2 + $0x2d0] sm:$0xf0]  ;;  %v3083_v34 = vor.u32 %v4408_v21, %v3080_v22 }
  0x41   :  { %1358 = vmatpush.bf16.msrb.mxu3 %v3003_v38  ;;  %v4464_v28 = vld [vmem:[#allocation2 + $0x2c4] sm:$0xf]  ;;  %v3560_v37 = vld [vmem:[#allocation2 + $0x4d0] sm:$0xf0]  ;;  %v3707_v38 = vor.u32 %v4564_v26, %v3704_v27 }
  0x42   :  { %1370 = vmatpush.bf16.msra.mxu2 %v3147_v33  ;;  %1320 = vmatpush.bf16.msrb.mxu0 %v3495_v47  ;;  %v4496_v32 = vld [vmem:[#allocation2 + $0x3c4] sm:$0xf]  ;;  %v3432_v33 = vld [vmem:[#allocation2 + $0x3d0] sm:$0xf0]  ;;  %v3307_v39 = vor.u32 %v4464_v28, %v3304_v31 }
  0x43   :  { %1333 = vmatpush.bf16.msrb.mxu1 %v3623_v50  ;;  %v4528_v36 = vld [vmem:[#allocation2 + $0x4c4] sm:$0xf]  ;;  %v3435_v40 = vor.u32 %v4496_v32, %v3432_v33  ;;  %v3688_v42 = vld [vmem:[#allocation2 + $0x5d0] sm:$0xf0] }
  0x44   :  { %v4560_v41 = vld [vmem:[#allocation2 + $0x5c4] sm:$0xf]  ;;  %v3563_v44 = vor.u32 %v4528_v36, %v3560_v37  ;;  %v3416_v48 = vld [vmem:[#allocation2 + $0x3b0] sm:$0xf0] }
  0x45   :  { %1359 = vmatpush.bf16.msrb.mxu3 %v2987_v52  ;;  %v4460_v43 = vld [vmem:[#allocation2 + $0x2a4] sm:$0xf]  ;;  %v3544_v50 = vld [vmem:[#allocation2 + $0x4b0] sm:$0xf0]  ;;  %v3691_v52 = vor.u32 %v4560_v41, %v3688_v42 }
  0x46   :  { %1371 = vmatpush.bf16.msra.mxu2 %v3131_v46  ;;  %1321 = vmatpush.bf16.msrb.mxu0 %v3479_v62  ;;  %v3288_v46 = vld [vmem:[#allocation2 + $0x2b0] sm:$0xf0]  ;;  %v4492_v47 = vld [vmem:[#allocation2 + $0x3a4] sm:$0xf] }
  0x47   :  { %1334 = vmatpush.bf16.msrb.mxu1 %v3607_v2  ;;  %v4524_v49 = vld [vmem:[#allocation2 + $0x4a4] sm:$0xf]  ;;  %v3291_v53 = vor.u32 %v4460_v43, %v3288_v46  ;;  %v3419_v54 = vor.u32 %v4492_v47, %v3416_v48  ;;  %v3672_v58 = vld [vmem:[#allocation2 + $0x5b0] sm:$0xf0] }
  0x48   :  { %v4556_v56 = vld [vmem:[#allocation2 + $0x5a4] sm:$0xf]  ;;  %v3547_v60 = vor.u32 %v4524_v49, %v3544_v50  ;;  %v3400_v63 = vld [vmem:[#allocation2 + $0x390] sm:$0xf0] }
  0x49   :  { %1360 = vmatpush.bf16.msrb.mxu3 %v2971_v3  ;;  %v4456_v59 = vld [vmem:[#allocation2 + $0x284] sm:$0xf]  ;;  %v3528_v1 = vld [vmem:[#allocation2 + $0x490] sm:$0xf0]  ;;  %v3675_v2 = vor.u32 %v4556_v56, %v3672_v58  ;;  %v3070_v56 = vld [vmem:[#allocation2 + $0xe8] sm:$0xf] }
  0x4a   :  { %1372 = vmatpush.bf16.msra.mxu2 %v3115_v61  ;;  %1322 = vmatpush.bf16.msrb.mxu0 %v3463_v15  ;;  %v3272_v61 = vld [vmem:[#allocation2 + $0x290] sm:$0xf0]  ;;  %v4488_v62 = vld [vmem:[#allocation2 + $0x384] sm:$0xf]  ;;  %v4407_v58 = vld [vmem:[#allocation2 + $0xf4] sm:$0xf0] }
  0x4b   :  { %1335 = vmatpush.bf16.msrb.mxu1 %v3591_v19  ;;  %v4520_v0 = vld [vmem:[#allocation2 + $0x484] sm:$0xf]  ;;  %v3275_v3 = vor.u32 %v4456_v59, %v3272_v61  ;;  %v3403_v4 = vor.u32 %v4488_v62, %v3400_v63  ;;  %v3656_v6 = vld [vmem:[#allocation2 + $0x590] sm:$0xf0]  ;;  %v3326_v62 = vld [vmem:[#allocation2 + $0x2e8] sm:$0xf] }
  0x4c   :  { %v4552_v5 = vld [vmem:[#allocation2 + $0x584] sm:$0xf]  ;;  %v3531_v9 = vor.u32 %v4520_v0, %v3528_v1  ;;  %v3256_v10 = vld [vmem:[#allocation2 + $0x270] sm:$0xf0]  ;;  %v4471_v63 = vld [vmem:[#allocation2 + $0x2f4] sm:$0xf0] }
  0x4d   :  { %1361 = vmatpush.bf16.msrb.mxu3 %v2955_v20  ;;  %1323 = vmatmul.bf16.vlgmr.msrb.gmra.mxu0 %v4876_v30  ;;  %v4452_v8 = vld [vmem:[#allocation2 + $0x264] sm:$0xf]  ;;  %v3384_v12 = vld [vmem:[#allocation2 + $0x370] sm:$0xf0]  ;;  %v3659_v15 = vor.u32 %v4552_v5, %v3656_v6  ;;  %v3071_v5 = vor.u32 %v4407_v58, %v3070_v56  ;;  %v3454_v6 = vld [vmem:[#allocation2 + $0x3e8] sm:$0xf] }
  0x4e   :  { %1373 = vmatpush.bf16.msra.mxu2 %v3099_v14  ;;  %1380 = vmatpush.bf16.msra.mxu0 %v3323_v24  ;;  %v4484_v11 = vld [vmem:[#allocation2 + $0x364] sm:$0xf]  ;;  %v3512_v14 = vld [vmem:[#allocation2 + $0x470] sm:$0xf0]  ;;  %v3259_v16 = vor.u32 %v4452_v8, %v3256_v10  ;;  %v4503_v8 = vld [vmem:[#allocation2 + $0x3f4] sm:$0xf0] }
  0x4f   :  { %1393 = vmatpush.bf16.msra.mxu1 %v3451_v25  ;;  %v4516_v13 = vld [vmem:[#allocation2 + $0x464] sm:$0xf]  ;;  %v3387_v17 = vor.u32 %v4484_v11, %v3384_v12  ;;  %v3640_v19 = vld [vmem:[#allocation2 + $0x570] sm:$0xf0]  ;;  %v3198_v10 = vld [vmem:[#allocation2 + $0x1e8] sm:$0xf]  ;;  %v3327_v12 = vor.u32 %v4471_v63, %v3326_v62 }
  0x50   :  { %1336 = vmatmul.bf16.vlgmr.msrb.gmra.mxu1 %v4878_v35  ;;  %1362 = vmatmul.bf16.vlgmr.msrb.gmra.mxu3 %v4850_v55  ;;  %v4548_v18 = vld [vmem:[#allocation2 + $0x564] sm:$0xf]  ;;  %v3515_v21 = vor.u32 %v4516_v13, %v3512_v14  ;;  %v3240_v22 = vld [vmem:[#allocation2 + $0x250] sm:$0xf0]  ;;  %v4439_v11 = vld [vmem:[#allocation2 + $0x1f4] sm:$0xf0] }
  0x51   :  { %1406 = vmatpush.bf16.msra.mxu3 %v3579_v29  ;;  %v4448_v20 = vld [vmem:[#allocation2 + $0x244] sm:$0xf]  ;;  %v3368_v24 = vld [vmem:[#allocation2 + $0x350] sm:$0xf0]  ;;  %v3643_v27 = vor.u32 %v4548_v18, %v3640_v19  ;;  %v3054_v14 = vld [vmem:[#allocation2 + $0xc8] sm:$0xf]  ;;  %v3199_v19 = vor.u32 %v4439_v11, %v3198_v10 }
  0x52   :  { %1374 = vmatpush.bf16.msra.mxu2 %v3083_v34  ;;  %1381 = vmatpush.bf16.msra.mxu0 %v3307_v39  ;;  %v4480_v23 = vld [vmem:[#allocation2 + $0x344] sm:$0xf]  ;;  %v3496_v26 = vld [vmem:[#allocation2 + $0x450] sm:$0xf0]  ;;  %v3243_v28 = vor.u32 %v4448_v20, %v3240_v22  ;;  %v4467_v18 = vld [vmem:[#allocation2 + $0x2d4] sm:$0xf0] }
  0x53   :  { %1394 = vmatpush.bf16.msra.mxu1 %v3435_v40  ;;  %v4512_v25 = vld [vmem:[#allocation2 + $0x444] sm:$0xf]  ;;  %v3371_v29 = vor.u32 %v4480_v23, %v3368_v24  ;;  %v3624_v32 = vld [vmem:[#allocation2 + $0x550] sm:$0xf0]  ;;  %v3438_v20 = vld [vmem:[#allocation2 + $0x3c8] sm:$0xf] }
  0x54   :  { %v4544_v31 = vld [vmem:[#allocation2 + $0x544] sm:$0xf]  ;;  %v3499_v34 = vor.u32 %v4512_v25, %v3496_v26  ;;  %v3224_v36 = vld [vmem:[#allocation2 + $0x230] sm:$0xf0]  ;;  %v3182_v23 = vld [vmem:[#allocation2 + $0x1c8] sm:$0xf] }
  0x55   :  { %1407 = vmatpush.bf16.msra.mxu3 %v3563_v44  ;;  %1375 = vmatmul.bf16.vlgmr.msra.gmra.mxu2 %v4859_v7  ;;  %v4444_v33 = vld [vmem:[#allocation2 + $0x224] sm:$0xf]  ;;  %v3480_v40 = vld [vmem:[#allocation2 + $0x430] sm:$0xf0]  ;;  %v3627_v41 = vor.u32 %v4544_v31, %v3624_v32  ;;  %v4435_v24 = vld [vmem:[#allocation2 + $0x1d4] sm:$0xf0] }
  0x56   :  { %1419 = vmatpush.bf16.msrb.mxu2 %v3707_v38  ;;  %1382 = vmatpush.bf16.msra.mxu0 %v3291_v53  ;;  %v4476_v37 = vld [vmem:[#allocation2 + $0x324] sm:$0xf]  ;;  %v3352_v38 = vld [vmem:[#allocation2 + $0x330] sm:$0xf0]  ;;  %v3227_v46 = vor.u32 %v4444_v33, %v3224_v36  ;;  %v3038_v26 = vld [vmem:[#allocation2 + $0xa8] sm:$0xf]  ;;  %v3183_v32 = vor.u32 %v4435_v24, %v3182_v23 }
  0x57   :  { %1395 = vmatpush.bf16.msra.mxu1 %v3419_v54  ;;  %v4508_v39 = vld [vmem:[#allocation2 + $0x424] sm:$0xf]  ;;  %v3608_v43 = vld [vmem:[#allocation2 + $0x530] sm:$0xf0]  ;;  %v3355_v47 = vor.u32 %v4476_v37, %v3352_v38  ;;  %v4463_v31 = vld [vmem:[#allocation2 + $0x2b4] sm:$0xf0] }
  0x58   :  { %v4540_v42 = vld [vmem:[#allocation2 + $0x524] sm:$0xf]  ;;  %v3208_v48 = vld [vmem:[#allocation2 + $0x210] sm:$0xf0]  ;;  %v3422_v33 = vld [vmem:[#allocation2 + $0x3a8] sm:$0xf] }
  0x59   :  { %1408 = vmatpush.bf16.msra.mxu3 %v3547_v60  ;;  %v4440_v44 = vld [vmem:[#allocation2 + $0x204] sm:$0xf]  ;;  %v3336_v50 = vld [vmem:[#allocation2 + $0x310] sm:$0xf0]  ;;  %v3611_v60 = vor.u32 %v4540_v42, %v3608_v43  ;;  %v3166_v37 = vld [vmem:[#allocation2 + $0x1a8] sm:$0xf] }
  0x5a   :  { %1420 = vmatpush.bf16.msrb.mxu2 %v3691_v52  ;;  %1383 = vmatpush.bf16.msra.mxu0 %v3275_v3  ;;  %v4472_v49 = vld [vmem:[#allocation2 + $0x304] sm:$0xf]  ;;  %v3483_v52 = vor.u32 %v4508_v39, %v3480_v40  ;;  %v3464_v54 = vld [vmem:[#allocation2 + $0x410] sm:$0xf0]  ;;  %v3211_v0 = vor.u32 %v4440_v44, %v3208_v48  ;;  %v4431_v38 = vld [vmem:[#allocation2 + $0x1b4] sm:$0xf0] }
  0x5b   :  { %1396 = vmatpush.bf16.msra.mxu1 %v3403_v4  ;;  %v4504_v53 = vld [vmem:[#allocation2 + $0x404] sm:$0xf]  ;;  %v3720_v61 = vld [vmem:[#allocation2 + $0x610] sm:$0xf0]  ;;  %v3339_v1 = vor.u32 %v4472_v49, %v3336_v50  ;;  %v3022_v40 = vld [vmem:[#allocation2 + $0x88] sm:$0xf] }
  0x5c   :  { %v4568_v59 = vld [vmem:[#allocation2 + $0x604] sm:$0xf]  ;;  %v3592_v3 = vld [vmem:[#allocation2 + $0x510] sm:$0xf0]  ;;  %v3467_v4 = vor.u32 %v4504_v53, %v3464_v54  ;;  %v3278_v43 = vld [vmem:[#allocation2 + $0x288] sm:$0xf] }
  0x5d   :  { %1409 = vmatpush.bf16.msra.mxu3 %v3531_v9  ;;  %v3723_v9 = vor.u32 %v4568_v59, %v3720_v61  ;;  %v4459_v44 = vld [vmem:[#allocation2 + $0x294] sm:$0xf0]  ;;  %v3150_v50 = vld [vmem:[#allocation2 + $0x188] sm:$0xf] }
  0x5e   :  { %1421 = vmatpush.bf16.msrb.mxu2 %v3675_v2  ;;  %1384 = vmatpush.bf16.msra.mxu0 %v3259_v16  ;;  %v4536_v2 = vld [vmem:[#allocation2 + $0x504] sm:$0xf]  ;;  %v3455_v16 = vor.u32 %v4503_v8, %v3454_v6  ;;  %v4491_v48 = vld [vmem:[#allocation2 + $0x394] sm:$0xf0]  ;;  %v3279_v53 = vor.u32 %v4459_v44, %v3278_v43  ;;  %v3006_v54 = vld [vmem:[#allocation2 + $0x68] sm:$0xf] }
  0x5f   :  { %1397 = vmatpush.bf16.msra.mxu1 %v3387_v17  ;;  %v3595_v13 = vor.u32 %v4536_v2, %v3592_v3  ;;  %v3310_v17 = vld [vmem:[#allocation2 + $0x2c8] sm:$0xf]  ;;  %v4391_v56 = vld [vmem:[#allocation2 + $0x74] sm:$0xf0] }
  0x60   :  { %v3311_v25 = vor.u32 %v4467_v18, %v3310_v17  ;;  %v3262_v59 = vld [vmem:[#allocation2 + $0x268] sm:$0xf]  ;;  %v4487_v63 = vld [vmem:[#allocation2 + $0x374] sm:$0xf0] }
  0x61   :  { %1410 = vmatpush.bf16.msra.mxu3 %v3515_v21  ;;  %v4499_v21 = vld [vmem:[#allocation2 + $0x3d4] sm:$0xf0]  ;;  %v3390_v62 = vld [vmem:[#allocation2 + $0x368] sm:$0xf] }
  0x62   :  { %1422 = vmatpush.bf16.msrb.mxu2 %v3659_v15  ;;  %1385 = vmatpush.bf16.msra.mxu0 %v3243_v28  ;;  %v4403_v15 = vld [vmem:[#allocation2 + $0xd4] sm:$0xf0]  ;;  %v3439_v28 = vor.u32 %v4499_v21, %v3438_v20  ;;  %v3391_v6 = vor.u32 %v4487_v63, %v3390_v62  ;;  %v3246_v8 = vld [vmem:[#allocation2 + $0x248] sm:$0xf] }
  0x63   :  { %1398 = vmatpush.bf16.msra.mxu1 %v3371_v29  ;;  %v3055_v22 = vor.u32 %v4403_v15, %v3054_v14  ;;  %v3294_v29 = vld [vmem:[#allocation2 + $0x2a8] sm:$0xf]  ;;  %v4423_v2 = vld [vmem:[#allocation2 + $0x174] sm:$0xf0] }
  0x64   :  { %v3295_v39 = vor.u32 %v4463_v31, %v3294_v29  ;;  %v3374_v11 = vld [vmem:[#allocation2 + $0x348] sm:$0xf]  ;;  %v4419_v15 = vld [vmem:[#allocation2 + $0x154] sm:$0xf0] }
  0x65   :  { %1411 = vmatpush.bf16.msra.mxu3 %v3499_v34  ;;  %v4495_v34 = vld [vmem:[#allocation2 + $0x3b4] sm:$0xf0]  ;;  %v3118_v14 = vld [vmem:[#allocation2 + $0x148] sm:$0xf] }
  0x66   :  { %1423 = vmatpush.bf16.msrb.mxu2 %v3643_v27  ;;  %1386 = vmatpush.bf16.msra.mxu0 %v3227_v46  ;;  %v4399_v27 = vld [vmem:[#allocation2 + $0xb4] sm:$0xf0]  ;;  %v3423_v42 = vor.u32 %v4495_v34, %v3422_v33  ;;  %v3167_v46 = vor.u32 %v4431_v38, %v3166_v37  ;;  %v2974_v17 = vld [vmem:[#allocation2 + $0x28] sm:$0xf] }
  0x67   :  { %1399 = vmatpush.bf16.msra.mxu1 %v3355_v47  ;;  %v3039_v36 = vor.u32 %v4399_v27, %v3038_v26  ;;  %v3406_v47 = vld [vmem:[#allocation2 + $0x388] sm:$0xf]  ;;  %v4383_v18 = vld [vmem:[#allocation2 + $0x34] sm:$0xf0] }
  0x68   :  { %v3407_v58 = vor.u32 %v4491_v48, %v3406_v47  ;;  %v3230_v20 = vld [vmem:[#allocation2 + $0x228] sm:$0xf]  ;;  %v4447_v21 = vld [vmem:[#allocation2 + $0x234] sm:$0xf0]  ;;  %v4405_v47 = vld [vmem:[#allocation2 + $0xec] sm:$0xf] }
  0x69   :  { %1412 = vmatpush.bf16.msra.mxu3 %v3483_v52  ;;  %v4427_v52 = vld [vmem:[#allocation2 + $0x194] sm:$0xf0]  ;;  %v3358_v23 = vld [vmem:[#allocation2 + $0x328] sm:$0xf]  ;;  %v3231_v29 = vor.u32 %v4447_v21, %v3230_v20  ;;  %v3072_v48 = vld [vmem:[#allocation2 + $0xf8] sm:$0xf0] }
  0x6a   :  { %1424 = vmatpush.bf16.msrb.mxu2 %v3627_v41  ;;  %1387 = vmatpush.bf16.msra.mxu0 %v3211_v0  ;;  %v4395_v41 = vld [vmem:[#allocation2 + $0x94] sm:$0xf0]  ;;  %v3151_v61 = vor.u32 %v4427_v52, %v3150_v50  ;;  %v3007_v0 = vor.u32 %v4391_v56, %v3006_v54  ;;  %v3102_v26 = vld [vmem:[#allocation2 + $0x128] sm:$0xf]  ;;  %v3075_v63 = vor.u32 %v4405_v47, %v3072_v48 }
  0x6b   :  { %1400 = vmatpush.bf16.msra.mxu1 %v3339_v1  ;;  %v3023_v49 = vor.u32 %v4395_v41, %v3022_v40  ;;  %v3134_v1 = vld [vmem:[#allocation2 + $0x168] sm:$0xf]  ;;  %v4479_v24 = vld [vmem:[#allocation2 + $0x334] sm:$0xf0] }
  0x6c   :  { %v3135_v10 = vor.u32 %v4423_v2, %v3134_v1  ;;  %v4415_v27 = vld [vmem:[#allocation2 + $0x134] sm:$0xf0]  ;;  %v3359_v34 = vor.u32 %v4479_v24, %v3358_v23  ;;  %v3214_v37 = vld [vmem:[#allocation2 + $0x208] sm:$0xf]  ;;  %v4401_v1 = vld [vmem:[#allocation2 + $0xcc] sm:$0xf] }
  0x6d   :  { %1413 = vmatpush.bf16.msra.mxu3 %v3467_v4  ;;  %1388 = vmatmul.bf16.vlgmr.msra.gmra.mxu0 %v4848_v51  ;;  %v2990_v4 = vld [vmem:[#allocation2 + $0x48] sm:$0xf]  ;;  %v4379_v31 = vld [vmem:[#allocation2 + $0x14] sm:$0xf0]  ;;  %v3103_v40 = vor.u32 %v4415_v27, %v3102_v26  ;;  %v3056_v2 = vld [vmem:[#allocation2 + $0xd8] sm:$0xf0] }
  0x6e   :  { %1425 = vmatpush.bf16.msrb.mxu2 %v3611_v60  ;;  %1471 = vmatpush.bf16.msrb.mxu0 %v3327_v12  ;;  %v4455_v60 = vld [vmem:[#allocation2 + $0x274] sm:$0xf0]  ;;  %v3710_v52 = vld [vmem:[#allocation2 + $0x5e8] sm:$0xf]  ;;  %v3168_v23 = vld [vmem:[#allocation2 + $0x1b8] sm:$0xf0] }
  0x6f   :  { %1445 = vmatpush.bf16.msrb.mxu1 %v3071_v5  ;;  %v3263_v3 = vor.u32 %v4455_v60, %v3262_v59  ;;  %v4387_v5 = vld [vmem:[#allocation2 + $0x54] sm:$0xf0]  ;;  %v3566_v54 = vld [vmem:[#allocation2 + $0x4c8] sm:$0xf]  ;;  %v4437_v60 = vld [vmem:[#allocation2 + $0x1ec] sm:$0xf] }
  0x70   :  { %1414 = vmatmul.bf16.vlgmr.msra.gmra.mxu3 %v4876_v30  ;;  %1401 = vmatmul.bf16.vlgmr.msra.gmra.mxu1 %v4852_v57  ;;  %v4483_v12 = vld [vmem:[#allocation2 + $0x354] sm:$0xf0]  ;;  %v3534_v20 = vld [vmem:[#allocation2 + $0x488] sm:$0xf]  ;;  %v4393_v26 = vld [vmem:[#allocation2 + $0x8c] sm:$0xf] }
  0x71   :  { %1439 = vmatpush.bf16.msrb.mxu3 %v3723_v9  ;;  %v4451_v9 = vld [vmem:[#allocation2 + $0x254] sm:$0xf0]  ;;  %v3024_v27 = vld [vmem:[#allocation2 + $0x98] sm:$0xf0]  ;;  %v3502_v47 = vld [vmem:[#allocation2 + $0x448] sm:$0xf] }
  0x72   :  { %1426 = vmatpush.bf16.msrb.mxu2 %v3595_v13  ;;  %1472 = vmatpush.bf16.msrb.mxu0 %v3311_v25  ;;  %v2991_v13 = vor.u32 %v4387_v5, %v2990_v4  ;;  %v2975_v25 = vor.u32 %v4383_v18, %v2974_v17  ;;  %v4535_v33 = vld [vmem:[#allocation2 + $0x4f4] sm:$0xf0]  ;;  %v3694_v5 = vld [vmem:[#allocation2 + $0x5c8] sm:$0xf] }
  0x73   :  { %1446 = vmatpush.bf16.msrb.mxu1 %v3055_v22  ;;  %v3119_v22 = vor.u32 %v4419_v15, %v3118_v14  ;;  %v4443_v38 = vld [vmem:[#allocation2 + $0x214] sm:$0xf0]  ;;  %v4397_v14 = vld [vmem:[#allocation2 + $0xac] sm:$0xf]  ;;  %v3040_v15 = vld [vmem:[#allocation2 + $0xb8] sm:$0xf0] }
  0x74   :  { %v4475_v41 = vld [vmem:[#allocation2 + $0x314] sm:$0xf0]  ;;  %v3215_v50 = vor.u32 %v4443_v38, %v3214_v37  ;;  %v3678_v18 = vld [vmem:[#allocation2 + $0x5a8] sm:$0xf]  ;;  %v3043_v24 = vor.u32 %v4397_v14, %v3040_v15  ;;  %v3152_v37 = vld [vmem:[#allocation2 + $0x198] sm:$0xf0]  ;;  %v3027_v38 = vor.u32 %v4393_v26, %v3024_v27 }
  0x75   :  { %1458 = vmatpush.bf16.msra.mxu3 %v3199_v19  ;;  %1427 = vmatmul.bf16.vlgmr.msrb.gmra.mxu2 %v4878_v35  ;;  %v3375_v19 = vor.u32 %v4483_v12, %v3374_v11  ;;  %v4571_v43 = vld [vmem:[#allocation2 + $0x614] sm:$0xf0]  ;;  %v3184_v11 = vld [vmem:[#allocation2 + $0x1d8] sm:$0xf0]  ;;  %v3059_v12 = vor.u32 %v4401_v1, %v3056_v2 }
  0x76   :  { %1484 = vmatpush.bf16.msra.mxu2 %v3455_v16  ;;  %1473 = vmatpush.bf16.msrb.mxu0 %v3295_v39  ;;  %v3247_v16 = vor.u32 %v4451_v9, %v3246_v8  ;;  %v3342_v39 = vld [vmem:[#allocation2 + $0x308] sm:$0xf]  ;;  %v4527_v9 = vld [vmem:[#allocation2 + $0x4b4] sm:$0xf0]  ;;  %v3120_v1 = vld [vmem:[#allocation2 + $0x158] sm:$0xf0] }
  0x77   :  { %1447 = vmatpush.bf16.msrb.mxu1 %v3039_v36  ;;  %v3086_v36 = vld [vmem:[#allocation2 + $0x108] sm:$0xf]  ;;  %v3343_v56 = vor.u32 %v4475_v41, %v3342_v39  ;;  %v4523_v21 = vld [vmem:[#allocation2 + $0x494] sm:$0xf0]  ;;  %v3008_v41 = vld [vmem:[#allocation2 + $0x78] sm:$0xf0] }
  0x78   :  { %v3550_v8 = vld [vmem:[#allocation2 + $0x4a8] sm:$0xf]  ;;  %v4515_v48 = vld [vmem:[#allocation2 + $0x454] sm:$0xf0]  ;;  %v3104_v14 = vld [vmem:[#allocation2 + $0x138] sm:$0xf0] }
  0x79   :  { %1459 = vmatpush.bf16.msra.mxu3 %v3183_v32  ;;  %v3582_v32 = vld [vmem:[#allocation2 + $0x4e8] sm:$0xf]  ;;  %v3456_v26 = vld [vmem:[#allocation2 + $0x3f8] sm:$0xf0] }
  0x7a   :  { %1485 = vmatpush.bf16.msra.mxu2 %v3439_v28  ;;  %1474 = vmatpush.bf16.msrb.mxu0 %v3279_v53  ;;  %v2958_v28 = vld [vmem:[#allocation2 + $0x8] sm:$0xf]  ;;  %v4567_v53 = vld [vmem:[#allocation2 + $0x5f4] sm:$0xf0] }
  0x7b   :  { %1448 = vmatpush.bf16.msrb.mxu1 %v3023_v49  ;;  %v2959_v44 = vor.u32 %v4379_v31, %v2958_v28  ;;  %v3583_v49 = vor.u32 %v4535_v33, %v3582_v32  ;;  %v3535_v28 = vor.u32 %v4523_v21, %v3534_v20  ;;  %v3662_v31 = vld [vmem:[#allocation2 + $0x588] sm:$0xf]  ;;  %v4555_v32 = vld [vmem:[#allocation2 + $0x594] sm:$0xf0]  ;;  %v4377_v20 = vld [vmem:[#allocation2 + $0xc] sm:$0xf] }
  0x7c   :  { %v3518_v33 = vld [vmem:[#allocation2 + $0x468] sm:$0xf]  ;;  %v3663_v39 = vor.u32 %v4555_v32, %v3662_v31  ;;  %v2960_v21 = vld [vmem:[#allocation2 + $0x18] sm:$0xf0]  ;;  %v4465_v31 = vld [vmem:[#allocation2 + $0x2cc] sm:$0xf] }
  0x7d   :  { %1460 = vmatpush.bf16.msra.mxu3 %v3167_v46  ;;  %v4411_v46 = vld [vmem:[#allocation2 + $0x114] sm:$0xf0]  ;;  %v2963_v32 = vor.u32 %v4377_v20, %v2960_v21  ;;  %v4485_v20 = vld [vmem:[#allocation2 + $0x36c] sm:$0xf] }
  0x7e   :  { %1486 = vmatpush.bf16.msra.mxu2 %v3423_v42  ;;  %1475 = vmatpush.bf16.msrb.mxu0 %v3263_v3  ;;  %v3726_v42 = vld [vmem:[#allocation2 + $0x608] sm:$0xf]  ;;  %v3087_v62 = vor.u32 %v4411_v46, %v3086_v36  ;;  %v4425_v36 = vld [vmem:[#allocation2 + $0x18c] sm:$0xf]  ;;  %v4551_v46 = vld [vmem:[#allocation2 + $0x574] sm:$0xf0] }
  0x7f   :  { %1449 = vmatpush.bf16.msrb.mxu1 %v3007_v0  ;;  %v3727_v59 = vor.u32 %v4571_v43, %v3726_v42  ;;  %v3711_v0 = vor.u32 %v4567_v53, %v3710_v52  ;;  %v3155_v43 = vor.u32 %v4425_v36, %v3152_v37  ;;  %v3088_v36 = vld [vmem:[#allocation2 + $0x118] sm:$0xf0] }
  0x80   :  { %3733 = vmatmul.msk.bf16.vlgmr.msrb.gmra.mxu3 %vm1259_vm0, %v4866_v45 }
  0x81   :  { %1461 = vmatpush.bf16.msra.mxu3 %v3151_v61  ;;  %v3200_v61 = vld [vmem:[#allocation2 + $0x1f8] sm:$0xf0] }
  0x82   :  { %1487 = vmatpush.bf16.msra.mxu2 %v3407_v58  ;;  %1476 = vmatpush.bf16.msrb.mxu0 %v3247_v16  ;;  %v4531_v58 = vld [vmem:[#allocation2 + $0x4d4] sm:$0xf0]  ;;  %v3203_v4 = vor.u32 %v4437_v60, %v3200_v61  ;;  %v3551_v16 = vor.u32 %v4527_v9, %v3550_v8  ;;  %v3630_v60 = vld [vmem:[#allocation2 + $0x548] sm:$0xf] }
  0x83   :  { %1450 = vmatpush.bf16.msrb.mxu1 %v2991_v13  ;;  %v3567_v3 = vor.u32 %v4531_v58, %v3566_v54  ;;  %v4385_v54 = vld [vmem:[#allocation2 + $0x4c] sm:$0xf]  ;;  %v3503_v58 = vor.u32 %v4515_v48, %v3502_v47  ;;  %v4547_v61 = vld [vmem:[#allocation2 + $0x554] sm:$0xf0]  ;;  %v3614_v9 = vld [vmem:[#allocation2 + $0x528] sm:$0xf] }
  0x84   :  { %v4529_v47 = vld [vmem:[#allocation2 + $0x4cc] sm:$0xf]  ;;  %v3568_v48 = vld [vmem:[#allocation2 + $0x4d8] sm:$0xf0] }
  0x85   :  { %1462 = vmatpush.bf16.msra.mxu3 %v3135_v10  ;;  %v4433_v10 = vld [vmem:[#allocation2 + $0x1cc] sm:$0xf] }
  0x86   :  { %1488 = vmatpush.bf16.msra.mxu2 %v3391_v6  ;;  %1477 = vmatpush.bf16.msrb.mxu0 %v3231_v29  ;;  %v4563_v6 = vld [vmem:[#allocation2 + $0x5d4] sm:$0xf0]  ;;  %v3187_v17 = vor.u32 %v4433_v10, %v3184_v11  ;;  %v3470_v11 = vld [vmem:[#allocation2 + $0x408] sm:$0xf] }
  0x87   :  { %1451 = vmatpush.bf16.msrb.mxu1 %v2975_v25  ;;  %v3695_v13 = vor.u32 %v4563_v6, %v3694_v5  ;;  %v2976_v5 = vld [vmem:[#allocation2 + $0x38] sm:$0xf0]  ;;  %v4543_v10 = vld [vmem:[#allocation2 + $0x534] sm:$0xf0] }
  0x89   :  { %1463 = vmatpush.bf16.msra.mxu3 %v3119_v22  ;;  %v4429_v22 = vld [vmem:[#allocation2 + $0x1ac] sm:$0xf] }
  0x8a   :  { %1489 = vmatpush.bf16.msra.mxu2 %v3375_v19  ;;  %1478 = vmatpush.bf16.msrb.mxu0 %v3215_v50  ;;  %v4559_v19 = vld [vmem:[#allocation2 + $0x5b4] sm:$0xf0]  ;;  %v3171_v29 = vor.u32 %v4429_v22, %v3168_v23  ;;  %v3136_v50 = vld [vmem:[#allocation2 + $0x178] sm:$0xf0] }
  0x8b   :  { %1452 = vmatpush.bf16.msrb.mxu1 %v2959_v44  ;;  %v3679_v25 = vor.u32 %v4559_v19, %v3678_v18  ;;  %v3646_v44 = vld [vmem:[#allocation2 + $0x568] sm:$0xf]  ;;  %v3615_v18 = vor.u32 %v4543_v10, %v3614_v9  ;;  %v3408_v10 = vld [vmem:[#allocation2 + $0x398] sm:$0xf0] }
  0x8c   :  { %v3647_v53 = vor.u32 %v4551_v46, %v3646_v44  ;;  %v3598_v19 = vld [vmem:[#allocation2 + $0x508] sm:$0xf]  ;;  %v3440_v46 = vld [vmem:[#allocation2 + $0x3d8] sm:$0xf0] }
  0x8d   :  { %1464 = vmatpush.bf16.msra.mxu3 %v3103_v40  ;;  %1479 = vmatmul.bf16.vlgmr.msrb.gmra.mxu0 %v4848_v51  ;;  %v4389_v40 = vld [vmem:[#allocation2 + $0x6c] sm:$0xf] }
  0x8e   :  { %1490 = vmatpush.bf16.msra.mxu2 %v3359_v34  ;;  %1530 = vmatpush.bf16.msra.mxu0 %v3727_v59  ;;  %v4519_v34 = vld [vmem:[#allocation2 + $0x474] sm:$0xf0]  ;;  %v3011_v52 = vor.u32 %v4389_v40, %v3008_v41 }
  0x8f   :  { %1497 = vmatpush.bf16.msra.mxu1 %v3583_v49  ;;  %v3519_v42 = vor.u32 %v4519_v34, %v3518_v33  ;;  %v4421_v49 = vld [vmem:[#allocation2 + $0x16c] sm:$0xf]  ;;  %v3312_v33 = vld [vmem:[#allocation2 + $0x2d8] sm:$0xf0] }
  0x90   :  { %1453 = vmatmul.bf16.vlgmr.msrb.gmra.mxu1 %v4850_v55  ;;  %v3139_v59 = vor.u32 %v4421_v49, %v3136_v50  ;;  %v4409_v34 = vld [vmem:[#allocation2 + $0x10c] sm:$0xf] }
  0x91   :  { %1465 = vmatpush.bf16.msra.mxu3 %v3087_v62  ;;  %v3486_v62 = vld [vmem:[#allocation2 + $0x428] sm:$0xf]  ;;  %v3091_v44 = vor.u32 %v4409_v34, %v3088_v36  ;;  %v4461_v50 = vld [vmem:[#allocation2 + $0x2ac] sm:$0xf] }
  0x92   :  { %1491 = vmatpush.bf16.msra.mxu2 %v3343_v56  ;;  %1549 = vmatpush.bf16.msrb.mxu0 %v3203_v4  ;;  %v2992_v56 = vld [vmem:[#allocation2 + $0x58] sm:$0xf0]  ;;  %v4381_v4 = vld [vmem:[#allocation2 + $0x2c] sm:$0xf] }
  0x93   :  { %1498 = vmatpush.bf16.msra.mxu1 %v3567_v3  ;;  %v2995_v2 = vor.u32 %v4385_v54, %v2992_v56  ;;  %v3631_v3 = vor.u32 %v4547_v61, %v3630_v60  ;;  %v2979_v15 = vor.u32 %v4381_v4, %v2976_v5  ;;  %v3696_v54 = vld [vmem:[#allocation2 + $0x5d8] sm:$0xf0]  ;;  %v4481_v34 = vld [vmem:[#allocation2 + $0x34c] sm:$0xf] }
  0x94   :  { %1466 = vmatmul.bf16.vlgmr.msra.gmra.mxu3 %v4859_v7  ;;  %v3424_v61 = vld [vmem:[#allocation2 + $0x3b8] sm:$0xf0] }
  0x95   :  { %1510 = vmatpush.bf16.msrb.mxu3 %v3711_v0  ;;  %1492 = vmatmul.bf16.vlgmr.msra.gmra.mxu2 %v4852_v57  ;;  %v4417_v0 = vld [vmem:[#allocation2 + $0x14c] sm:$0xf]  ;;  %v3680_v4 = vld [vmem:[#allocation2 + $0x5b8] sm:$0xf0] }
  0x96   :  { %1536 = vmatpush.bf16.msrb.mxu2 %v3075_v63  ;;  %1550 = vmatpush.bf16.msrb.mxu0 %v3187_v17  ;;  %v4511_v63 = vld [vmem:[#allocation2 + $0x434] sm:$0xf0]  ;;  %v3123_v8 = vor.u32 %v4417_v0, %v3120_v1  ;;  %v3328_v17 = vld [vmem:[#allocation2 + $0x2f8] sm:$0xf0]  ;;  %v4457_v1 = vld [vmem:[#allocation2 + $0x28c] sm:$0xf] }
  0x97   :  { %1499 = vmatpush.bf16.msra.mxu1 %v3551_v16  ;;  %v3487_v6 = vor.u32 %v4511_v63, %v3486_v62  ;;  %v4469_v16 = vld [vmem:[#allocation2 + $0x2ec] sm:$0xf]  ;;  %v3552_v63 = vld [vmem:[#allocation2 + $0x4b8] sm:$0xf0] }
  0x98   :  { %v3331_v27 = vor.u32 %v4469_v16, %v3328_v17  ;;  %v4525_v62 = vld [vmem:[#allocation2 + $0x4ac] sm:$0xf]  ;;  %v3664_v17 = vld [vmem:[#allocation2 + $0x598] sm:$0xf0] }
  0x99   :  { %1511 = vmatpush.bf16.msrb.mxu3 %v3695_v13  ;;  %v4413_v13 = vld [vmem:[#allocation2 + $0x12c] sm:$0xf] }
  0x9a   :  { %1537 = vmatpush.bf16.msrb.mxu2 %v3059_v12  ;;  %1551 = vmatpush.bf16.msrb.mxu0 %v3171_v29  ;;  %v4507_v12 = vld [vmem:[#allocation2 + $0x414] sm:$0xf0]  ;;  %v3107_v23 = vor.u32 %v4413_v13, %v3104_v14  ;;  %v3584_v29 = vld [vmem:[#allocation2 + $0x4f8] sm:$0xf0]  ;;  %v4453_v14 = vld [vmem:[#allocation2 + $0x26c] sm:$0xf] }
  0x9b   :  { %1500 = vmatpush.bf16.msra.mxu1 %v3535_v28  ;;  %v3471_v22 = vor.u32 %v4507_v12, %v3470_v11  ;;  %v4533_v28 = vld [vmem:[#allocation2 + $0x4ec] sm:$0xf]  ;;  %v3536_v12 = vld [vmem:[#allocation2 + $0x498] sm:$0xf0] }
  0x9c   :  { %v3587_v41 = vor.u32 %v4533_v28, %v3584_v29  ;;  %v4521_v11 = vld [vmem:[#allocation2 + $0x48c] sm:$0xf]  ;;  %v3648_v29 = vld [vmem:[#allocation2 + $0x578] sm:$0xf0] }
  0x9d   :  { %1512 = vmatpush.bf16.msrb.mxu3 %v3679_v25  ;;  %3734 = vmatmul.msk.bf16.vlgmr.msra.gmra.mxu0 %vm1259_vm0, %v4866_v45  ;;  %v4501_v25 = vld [vmem:[#allocation2 + $0x3ec] sm:$0xf] }
  0x9e   :  { %1538 = vmatpush.bf16.msrb.mxu2 %v3043_v24  ;;  %1552 = vmatpush.bf16.msrb.mxu0 %v3155_v43  ;;  %v4539_v24 = vld [vmem:[#allocation2 + $0x514] sm:$0xf0]  ;;  %v3459_v40 = vor.u32 %v4501_v25, %v3456_v26  ;;  %v3315_v43 = vor.u32 %v4465_v31, %v3312_v33  ;;  %v4449_v26 = vld [vmem:[#allocation2 + $0x24c] sm:$0xf] }
  0x9f   :  { %1501 = vmatpush.bf16.msra.mxu1 %v3519_v42  ;;  %v3599_v37 = vor.u32 %v4539_v24, %v3598_v19  ;;  %v4497_v42 = vld [vmem:[#allocation2 + $0x3cc] sm:$0xf]  ;;  %v3539_v19 = vor.u32 %v4521_v11, %v3536_v12  ;;  %v3520_v24 = vld [vmem:[#allocation2 + $0x478] sm:$0xf0] }
  0xa0   :  { %v3443_v56 = vor.u32 %v4497_v42, %v3440_v46  ;;  %v4549_v28 = vld [vmem:[#allocation2 + $0x56c] sm:$0xf]  ;;  %v3472_v11 = vld [vmem:[#allocation2 + $0x418] sm:$0xf0] }
  0xa1   :  { %1513 = vmatpush.bf16.msrb.mxu3 %v3663_v39  ;;  %v3712_v39 = vld [vmem:[#allocation2 + $0x5f8] sm:$0xf0]  ;;  %v4445_v42 = vld [vmem:[#allocation2 + $0x22c] sm:$0xf] }
  0xa2   :  { %1539 = vmatpush.bf16.msrb.mxu2 %v3027_v38  ;;  %1553 = vmatpush.bf16.msrb.mxu0 %v3139_v59  ;;  %v4565_v38 = vld [vmem:[#allocation2 + $0x5ec] sm:$0xf] }
  0xa3   :  { %1502 = vmatpush.bf16.msra.mxu1 %v3503_v58  ;;  %v3715_v49 = vor.u32 %v4565_v38, %v3712_v39  ;;  %v3571_v58 = vor.u32 %v4529_v47, %v3568_v48  ;;  %v4493_v59 = vld [vmem:[#allocation2 + $0x3ac] sm:$0xf]  ;;  %v3376_v38 = vld [vmem:[#allocation2 + $0x358] sm:$0xf0] }
  0xa4   :  { %v3427_v5 = vor.u32 %v4493_v59, %v3424_v61  ;;  %v4513_v39 = vld [vmem:[#allocation2 + $0x44c] sm:$0xf]  ;;  %v3632_v47 = vld [vmem:[#allocation2 + $0x558] sm:$0xf0]  ;;  %v3379_v48 = vor.u32 %v4481_v34, %v3376_v38  ;;  %v3818_v38 = vld [vmem:[#allocation4 + $0xa0] sm:$0xf] }
  0xa5   :  { %1514 = vmatpush.bf16.msrb.mxu3 %v3647_v53  ;;  %v4561_v53 = vld [vmem:[#allocation2 + $0x5cc] sm:$0xf] }
  0xa6   :  { %1540 = vmatpush.bf16.msrb.mxu2 %v3011_v52  ;;  %1554 = vmatpush.bf16.msrb.mxu0 %v3123_v8  ;;  %v3296_v52 = vld [vmem:[#allocation2 + $0x2b8] sm:$0xf0]  ;;  %v3699_v0 = vor.u32 %v4561_v53, %v3696_v54  ;;  %v4489_v8 = vld [vmem:[#allocation2 + $0x38c] sm:$0xf] }
  0xa7   :  { %1503 = vmatpush.bf16.msra.mxu1 %v3487_v6  ;;  %v3299_v60 = vor.u32 %v4461_v50, %v3296_v52  ;;  %v3555_v6 = vor.u32 %v4525_v62, %v3552_v63  ;;  %v4545_v46 = vld [vmem:[#allocation2 + $0x54c] sm:$0xf]  ;;  %v3360_v53 = vld [vmem:[#allocation2 + $0x338] sm:$0xf0] }
  0xa8   :  { %v4477_v50 = vld [vmem:[#allocation2 + $0x32c] sm:$0xf]  ;;  %v3616_v63 = vld [vmem:[#allocation2 + $0x538] sm:$0xf0] }
  0xa9   :  { %1515 = vmatpush.bf16.msrb.mxu3 %v3631_v3  ;;  %v4557_v3 = vld [vmem:[#allocation2 + $0x5ac] sm:$0xf] }
  0xaa   :  { %1541 = vmatpush.bf16.msrb.mxu2 %v2995_v2  ;;  %1555 = vmatpush.bf16.msrb.mxu0 %v3107_v23  ;;  %v3280_v2 = vld [vmem:[#allocation2 + $0x298] sm:$0xf0]  ;;  %v3683_v13 = vor.u32 %v4557_v3, %v3680_v4  ;;  %v4517_v23 = vld [vmem:[#allocation2 + $0x46c] sm:$0xf]  ;;  %v3363_v4 = vor.u32 %v4477_v50, %v3360_v53 }
  0xab   :  { %1504 = vmatpush.bf16.msra.mxu1 %v3471_v22  ;;  %v3283_v9 = vor.u32 %v4457_v1, %v3280_v2  ;;  %v3392_v22 = vld [vmem:[#allocation2 + $0x378] sm:$0xf0]  ;;  %v4902_v25 = vpop.f32.mrf.mxu1  ;;  %v3523_v33 = vor.u32 %v4517_v23, %v3520_v24  ;;  %v4509_v54 = vld [vmem:[#allocation2 + $0x42c] sm:$0xf]  ;;  %v4911_v2 = vld [vmem:[%s5103_s2] sm:$0xf] }
  0xac   :  { %v4441_v59 = vld [vmem:[#allocation2 + $0x20c] sm:$0xf]  ;;  %v3728_v1 = vld [vmem:[#allocation2 + $0x618] sm:$0xf0] }
  0xad   :  { %1516 = vmatpush.bf16.msrb.mxu3 %v3615_v18  ;;  %v3411_v18 = vor.u32 %v4489_v8, %v3408_v10  ;;  %v4541_v61 = vld [vmem:[#allocation2 + $0x52c] sm:$0xf] }
  0xae   :  { %1542 = vmatpush.bf16.msrb.mxu2 %v2979_v15  ;;  %1505 = vmatmul.bf16.vlgmr.msra.gmra.mxu1 %v4876_v30  ;;  %v3264_v15 = vld [vmem:[#allocation2 + $0x278] sm:$0xf0]  ;;  %v4900_v16 = vpop.f32.mrf.mxu0  ;;  %v4505_v10 = vld [vmem:[#allocation2 + $0x40c] sm:$0xf] }
  0xaf   :  { %1562 = vmatpush.bf16.msrb.mxu1 %v3331_v27  ;;  %1556 = vmatpush.bf16.msrb.mxu0 %v3091_v44  ;;  %v3267_v21 = vor.u32 %v4453_v14, %v3264_v15  ;;  %v3248_v27 = vld [vmem:[#allocation2 + $0x258] sm:$0xf0]  ;;  %v3850_v14 = vld [vmem:[#allocation4 + $0xe0] sm:$0xf]  ;;  %v4602_v15 = vld [vmem:[#allocation4 + $0xec] sm:$0xf0]  ;;  %v3475_v23 = vor.u32 %v4505_v10, %v3472_v11 }
  0xb0   :  { %v3251_v36 = vor.u32 %v4449_v26, %v3248_v27  ;;  %v3851_v24 = vor.u32 %v4602_v15, %v3850_v14  ;;  %v3834_v26 = vld [vmem:[#allocation4 + $0xc0] sm:$0xf]  ;;  %v4598_v27 = vld [vmem:[#allocation4 + $0xcc] sm:$0xf0] }
  0xb1   :  { %1517 = vmatpush.bf16.msrb.mxu3 %v3599_v37  ;;  %v3882_v11 = vld [vmem:[#allocation4 + $0x120] sm:$0xf]  ;;  %v4574_v15 = vld [vmem:[#allocation4 + $0xc] sm:$0xf0] }
  0xb2   :  { %1543 = vmatpush.bf16.msrb.mxu2 %v2963_v32  ;;  %1557 = vmatmul.bf16.vlgmr.msrb.gmra.mxu0 %v4859_v7  ;;  %v3395_v32 = vor.u32 %v4485_v20, %v3392_v22  ;;  %v4634_v20 = vld [vmem:[#allocation4 + $0x1ec] sm:$0xf0]  ;;  %v3738_v14 = vld [vmem:[#allocation4] sm:$0xf] }
  0xb3   :  { %1563 = vmatpush.bf16.msrb.mxu1 %v3315_v43  ;;  %1601 = vmatpush.bf16.msra.mxu0 %v3715_v49  ;;  %v4904_v31 = vpop.f32.mrf.mxu2  ;;  %v4906_v37 = vpop.f32.mrf.mxu3  ;;  %v3232_v43 = vld [vmem:[#allocation2 + $0x238] sm:$0xf0] }
  0xb4   :  { %1518 = vmatmul.bf16.vlgmr.msrb.gmra.mxu3 %v4878_v35  ;;  %v3235_v52 = vor.u32 %v4445_v42, %v3232_v43  ;;  %v1287_v62 = vpop.f32.mrf.mxu1  ;;  %v4626_v42 = vld [vmem:[#allocation4 + $0x1ac] sm:$0xf0] }
  0xb5   :  { %1575 = vmatpush.bf16.msra.mxu3 %v3459_v40  ;;  %1544 = vmatmul.bf16.vlgmr.msrb.gmra.mxu2 %v4850_v55  ;;  %v4553_v55 = vld [vmem:[#allocation2 + $0x58c] sm:$0xf]  ;;  %v3504_v40 = vld [vmem:[#allocation2 + $0x458] sm:$0xf0]  ;;  %v4582_v62 = vld [vmem:[#allocation4 + $0x4c] sm:$0xf0] }
  0xb6   :  { %1588 = vmatpush.bf16.msra.mxu2 %v3587_v41  ;;  %v3667_v7 = vor.u32 %v4553_v55, %v3664_v17  ;;  %v3651_v41 = vor.u32 %v4549_v28, %v3648_v29  ;;  %v1274_v44 = vpop.f32.mrf.mxu0  ;;  %v3507_v49 = vor.u32 %v4513_v39, %v3504_v40  ;;  %v4537_v55 = vld [vmem:[#allocation2 + $0x50c] sm:$0xf]  ;;  %v3962_v29 = vld [vmem:[#allocation4 + $0x1c0] sm:$0xf]  ;;  %v4594_v39 = vld [vmem:[#allocation4 + $0xac] sm:$0xf0] }
  0xb7   :  { %1564 = vmatpush.bf16.msrb.mxu1 %v3299_v60  ;;  %1602 = vmatpush.bf16.msra.mxu0 %v3699_v0  ;;  %v3216_v60 = vld [vmem:[#allocation2 + $0x218] sm:$0xf0]  ;;  %v4569_v0 = vld [vmem:[#allocation2 + $0x60c] sm:$0xf]  ;;  %v4590_v44 = vld [vmem:[#allocation4 + $0x8c] sm:$0xf0] }
  0xb8   :  { %v3219_v8 = vor.u32 %v4441_v59, %v3216_v60  ;;  %v3731_v17 = vor.u32 %v4569_v0, %v3728_v1  ;;  %v3898_v0 = vld [vmem:[#allocation4 + $0x140] sm:$0xf]  ;;  %v4614_v1 = vld [vmem:[#allocation4 + $0x14c] sm:$0xf0] }
  0xb9   :  { %1576 = vmatpush.bf16.msra.mxu3 %v3443_v56  ;;  %v3488_v56 = vld [vmem:[#allocation2 + $0x438] sm:$0xf0]  ;;  %v3899_v10 = vor.u32 %v4614_v1, %v3898_v0  ;;  %v4650_v0 = vld [vmem:[#allocation4 + $0x26c] sm:$0xf0]  ;;  %v272_v1 = vperm.slane %v4911_v2, 1 }
  0xba   :  { %1589 = vmatpush.bf16.msra.mxu2 %v3571_v58  ;;  %v3635_v58 = vor.u32 %v4545_v46, %v3632_v47 }
  0xbb   :  { %1565 = vmatpush.bf16.msrb.mxu1 %v3283_v9  ;;  %1603 = vmatpush.bf16.msra.mxu0 %v3683_v13  ;;  %v1300_v3 = vpop.f32.mrf.mxu2  ;;  %v3344_v9 = vld [vmem:[#allocation2 + $0x318] sm:$0xf0]  ;;  %v1313_v12 = vpop.f32.mrf.mxu3  ;;  %v3619_v13 = vor.u32 %v4541_v61, %v3616_v63  ;;  %v3770_v61 = vld [vmem:[#allocation4 + $0x40] sm:$0xf] }
  0xbc   :  { %v4610_v12 = vld [vmem:[#allocation4 + $0x12c] sm:$0xf0] }
  0xbd   :  { %1577 = vmatpush.bf16.msra.mxu3 %v3427_v5  ;;  %v3491_v5 = vor.u32 %v4509_v54, %v3488_v56  ;;  %v4586_v54 = vld [vmem:[#allocation4 + $0x6c] sm:$0xf0]  ;;  %v3914_v56 = vld [vmem:[#allocation4 + $0x160] sm:$0xf] }
  0xbe   :  { %1590 = vmatpush.bf16.msra.mxu2 %v3555_v6  ;;  %v4473_v6 = vld [vmem:[#allocation2 + $0x30c] sm:$0xf] }
  0xbf   :  { %1566 = vmatpush.bf16.msrb.mxu1 %v3267_v21  ;;  %1604 = vmatpush.bf16.msra.mxu0 %v3667_v7  ;;  %v271_v21 = vperm.slane %v4911_v2, 0  ;;  %v3347_v22 = vor.u32 %v4473_v6, %v3344_v9  ;;  %v4578_v9 = vld [vmem:[#allocation4 + $0x2c] sm:$0xf0] }
  0xc1   :  { %1578 = vmatpush.bf16.msra.mxu3 %v3411_v18  ;;  %v3600_v18 = vld [vmem:[#allocation2 + $0x518] sm:$0xf0] }
  0xc2   :  { %1591 = vmatpush.bf16.msra.mxu2 %v3539_v19  ;;  %v3978_v19 = vld [vmem:[#allocation4 + $0x1e0] sm:$0xf]  ;;  %v3603_v7 = vor.u32 %v4537_v55, %v3600_v18 }
  0xc3   :  { %1567 = vmatpush.bf16.msrb.mxu1 %v3251_v36  ;;  %1605 = vmatpush.bf16.msra.mxu0 %v3651_v41  ;;  %v3979_v28 = vor.u32 %v4634_v20, %v3978_v19  ;;  %v4916_v34 = vpop.f32.mrf.mxu2  ;;  %v3835_v36 = vor.u32 %v4598_v27, %v3834_v26  ;;  %v3946_v41 = vld [vmem:[#allocation4 + $0x1a0] sm:$0xf]  ;;  %v4666_v19 = vld [vmem:[#allocation4 + $0x2ec] sm:$0xf0]  ;;  %v3980_v26 = vld [vmem:[#allocation4 + $0x1f0] sm:$0xf0]  ;;  %v3739_v27 = vor.u32 %v4574_v15, %v3738_v14 }
  0xc4   :  { %v3947_v46 = vor.u32 %v4626_v42, %v3946_v41  ;;  %v4106_v18 = vld [vmem:[#allocation4 + $0x2e0] sm:$0xf]  ;;  %v4628_v42 = vld [vmem:[#allocation4 + $0x1c4] sm:$0xf] }
  0xc5   :  { %1579 = vmatpush.bf16.msra.mxu3 %v3395_v32  ;;  %v4630_v32 = vld [vmem:[#allocation4 + $0x1cc] sm:$0xf0]  ;;  %v4580_v15 = vld [vmem:[#allocation4 + $0x44] sm:$0xf] }
  0xc6   :  { %1592 = vmatpush.bf16.msra.mxu2 %v3523_v33  ;;  %v1273_v33 = vadd.f32 %v4900_v16, %v271_v21  ;;  %v3963_v40 = vor.u32 %v4630_v32, %v3962_v29  ;;  %v3802_v16 = vld [vmem:[#allocation4 + $0x80] sm:$0xf]  ;;  %v3852_v21 = vld [vmem:[#allocation4 + $0xf0] sm:$0xf0] }
  0xc7   :  { %1568 = vmatpush.bf16.msrb.mxu1 %v3235_v52  ;;  %1606 = vmatpush.bf16.msra.mxu0 %v3635_v58  ;;  %v3803_v53 = vor.u32 %v4590_v44, %v3802_v16  ;;  %v4074_v44 = vld [vmem:[#allocation4 + $0x2a0] sm:$0xf] }
  0xc8   :  { %v1286_v43 = vadd.f32 %v4902_v25, %v1273_v33  ;;  %v3786_v25 = vld [vmem:[#allocation4 + $0x60] sm:$0xf] }
  0xc9   :  { %1580 = vmatpush.bf16.msra.mxu3 %v3379_v48  ;;  %v3930_v48 = vld [vmem:[#allocation4 + $0x180] sm:$0xf]  ;;  %v3787_v59 = vor.u32 %v4586_v54, %v3786_v25  ;;  %v4654_v54 = vld [vmem:[#allocation4 + $0x28c] sm:$0xf0] }
  0xca   :  { %1593 = vmatpush.bf16.msra.mxu2 %v3507_v49  ;;  %v1324_v47 = vpop.f32.mrf.mxu0  ;;  %v4622_v49 = vld [vmem:[#allocation4 + $0x18c] sm:$0xf0]  ;;  %v1299_v50 = vadd.f32 %v4904_v31, %v1286_v43  ;;  %v3964_v43 = vld [vmem:[#allocation4 + $0x1d0] sm:$0xf0]  ;;  %v4058_v25 = vld [vmem:[#allocation4 + $0x280] sm:$0xf] }
  0xcb   :  { %1569 = vmatpush.bf16.msrb.mxu1 %v3219_v8  ;;  %1607 = vmatpush.bf16.msra.mxu0 %v3619_v13  ;;  %v1352_v52 = vpop.f32.mrf.mxu2  ;;  %v3754_v8 = vld [vmem:[#allocation4 + $0x20] sm:$0xf] }
  0xcc   :  { %v1312_v58 = vadd.f32 %v4906_v37, %v1299_v50  ;;  %v3755_v13 = vor.u32 %v4578_v9, %v3754_v8  ;;  %v3948_v52 = vld [vmem:[#allocation4 + $0x1b0] sm:$0xf0]  ;;  %v4616_v9 = vld [vmem:[#allocation4 + $0x164] sm:$0xf] }
  0xcd   :  { %1581 = vmatpush.bf16.msra.mxu3 %v3363_v4 }
  0xce   :  { %1594 = vmatpush.bf16.msra.mxu2 %v3491_v5  ;;  %1570 = vmatmul.bf16.vlgmr.msrb.gmra.mxu1 %v4848_v51  ;;  %v3819_v51 = vor.u32 %v4594_v39, %v3818_v38  ;;  %v1325_v60 = vadd.f32 %v1324_v47, %v1312_v58  ;;  %v3771_v5 = vor.u32 %v4582_v62, %v3770_v61  ;;  %v4596_v38 = vld [vmem:[#allocation4 + $0xc4] sm:$0xf]  ;;  %v3836_v39 = vld [vmem:[#allocation4 + $0xd0] sm:$0xf0] }
  0xcf   :  { %1621 = vmatpush.bf16.msra.mxu1 %v3731_v17  ;;  %1608 = vmatpush.bf16.msra.mxu0 %v3603_v7  ;;  %v3883_v17 = vor.u32 %v4610_v12, %v3882_v11  ;;  %v4632_v7 = vld [vmem:[#allocation4 + $0x1e4] sm:$0xf]  ;;  %v3839_v16 = vor.u32 %v4596_v38, %v3836_v39  ;;  %v4059_v58 = vor.u32 %v4654_v54, %v4058_v25  ;;  %v4026_v12 = vld [vmem:[#allocation4 + $0x240] sm:$0xf] }
  0xd0   :  { %v4592_v47 = vld [vmem:[#allocation4 + $0xa4] sm:$0xf] }
  0xd1   :  { %1582 = vmatpush.bf16.msra.mxu3 %v3347_v22  ;;  %v3866_v22 = vld [vmem:[#allocation4 + $0x100] sm:$0xf]  ;;  %v4572_v38 = vld [vmem:[#allocation4 + $0x4] sm:$0xf] }
  0xd2   :  { %1595 = vmatpush.bf16.msra.mxu2 %v3475_v23  ;;  %1609 = vmatmul.bf16.vlgmr.msra.gmra.mxu0 %v4878_v35  ;;  %v4618_v35 = vld [vmem:[#allocation4 + $0x16c] sm:$0xf0]  ;;  %v1326_v3 = vpop.f32.mrf.mxu0 }
  0xd3   :  { %2426 = vmatpush.bf16.msrb.mxu1 %v3979_v28  ;;  %v3915_v63 = vor.u32 %v4618_v35, %v3914_v56  ;;  %v4924_v31 = vpop.f32.mrf.mxu3  ;;  %v4606_v23 = vld [vmem:[#allocation4 + $0x10c] sm:$0xf0]  ;;  %v3804_v56 = vld [vmem:[#allocation4 + $0x90] sm:$0xf0] }
  0xd4   :  { %1583 = vmatmul.bf16.vlgmr.msra.gmra.mxu3 %v4852_v57  ;;  %v1337_v57 = vpop.f32.mrf.mxu1  ;;  %v3867_v33 = vor.u32 %v4606_v23, %v3866_v22  ;;  %v1364_v14 = vadd.f32 %v4924_v31, %v272_v1 }
  0xd5   :  { %2413 = vmatpush.bf16.msrb.mxu3 %v3851_v24  ;;  %1596 = vmatmul.bf16.vlgmr.msra.gmra.mxu2 %v4876_v30  ;;  %v3931_v30 = vor.u32 %v4622_v49, %v3930_v48  ;;  %v1338_v37 = vadd.f32 %v1337_v57, %v1325_v60  ;;  %v4107_v24 = vor.u32 %v4666_v19, %v4106_v18  ;;  %v3820_v48 = vld [vmem:[#allocation4 + $0xb0] sm:$0xf0]  ;;  %v4624_v57 = vld [vmem:[#allocation4 + $0x1a4] sm:$0xf] }
  0xd6   :  { %v3967_v49 = vor.u32 %v4628_v42, %v3964_v43  ;;  %v3951_v35 = vor.u32 %v4624_v57, %v3948_v52  ;;  %v3932_v60 = vld [vmem:[#allocation4 + $0x190] sm:$0xf0]  ;;  %v4612_v19 = vld [vmem:[#allocation4 + $0x144] sm:$0xf]  ;;  %v4638_v42 = vld [vmem:[#allocation4 + $0x20c] sm:$0xf0] }
  0xd7   :  { %2427 = vmatpush.bf16.msrb.mxu1 %v3963_v40  ;;  %v1351_v55 = vadd.f32 %v4916_v34, %v1338_v37  ;;  %2439 = vmatpush.bf16.msrb.mxu2 %v4107_v24  ;;  %v4090_v34 = vld [vmem:[#allocation4 + $0x2c0] sm:$0xf]  ;;  %v3983_v40 = vor.u32 %v4632_v7, %v3980_v26  ;;  %v4642_v7 = vld [vmem:[#allocation4 + $0x22c] sm:$0xf0]  ;;  %v3858_v43 = vld [vmem:[#allocation4 + $0xe8] sm:$0xf] }
  0xd8   :  { %v4928_v6 = vpop.f32.mrf.mxu2  ;;  %v4010_v24 = vld [vmem:[#allocation4 + $0x220] sm:$0xf] }
  0xd9   :  { %2414 = vmatpush.bf16.msrb.mxu3 %v3835_v36  ;;  %v1627_v29 = vmax.f32 %v1351_v55, 0.0  ;;  %v4662_v36 = vld [vmem:[#allocation4 + $0x2cc] sm:$0xf0]  ;;  %v3772_v55 = vld [vmem:[#allocation4 + $0x50] sm:$0xf0]  ;;  %v1377_v26 = vadd.f32 %v4928_v6, %v1364_v14 }
  0xda   :  { %v4091_v41 = vor.u32 %v4662_v36, %v4090_v34  ;;  %v3775_v23 = vor.u32 %v4580_v15, %v3772_v55  ;;  %v3884_v34 = vld [vmem:[#allocation4 + $0x130] sm:$0xf0]  ;;  %v3986_v14 = vld [vmem:[#allocation4 + $0x1e8] sm:$0xf]  ;;  %v4635_v15 = vld [vmem:[#allocation4 + $0x1f4] sm:$0xf0] }
  0xdb   :  { %2428 = vmatpush.bf16.msrb.mxu1 %v3947_v46  ;;  %v1365_v20 = vpop.f32.mrf.mxu3  ;;  %v4658_v46 = vld [vmem:[#allocation4 + $0x2ac] sm:$0xf0] }
  0xdc   :  { %v1339_v4 = vpop.f32.mrf.mxu1  ;;  %2440 = vmatpush.bf16.msrb.mxu2 %v4091_v41  ;;  %v4075_v50 = vor.u32 %v4658_v46, %v4074_v44  ;;  %v3900_v20 = vld [vmem:[#allocation4 + $0x150] sm:$0xf0]  ;;  %v3994_v41 = vld [vmem:[#allocation4 + $0x200] sm:$0xf]  ;;  %v4664_v44 = vld [vmem:[#allocation4 + $0x2e4] sm:$0xf] }
  0xdd   :  { %2415 = vmatpush.bf16.msrb.mxu3 %v3819_v51  ;;  %v4931_v51 = vpack.c.bf16 %v1627_v29, %v1627_v29  ;;  %v4584_v4 = vld [vmem:[#allocation4 + $0x64] sm:$0xf]  ;;  %v3903_v31 = vor.u32 %v4612_v19, %v3900_v20  ;;  %v3995_v6 = vor.u32 %v4638_v42, %v3994_v41  ;;  %v4108_v46 = vld [vmem:[#allocation4 + $0x2f0] sm:$0xf0]  ;;  %v4591_v19 = vld [vmem:[#allocation4 + $0x94] sm:$0xf0] }
  0xde   :  { %3735 = vmatmul.msk.bf16.vlgmr.msra.gmra.mxu1 %vm1259_vm0, %v4866_v45  ;;  %v4600_v45 = vld [vmem:[#allocation4 + $0xe4] sm:$0xf]  ;;  %v4111_v57 = vor.u32 %v4664_v44, %v4108_v46  ;;  %v4186_v42 = vld [vmem:[#allocation4 + $0x380] sm:$0xf] }
  0xdf   :  { %2429 = vmatpush.bf16.msrb.mxu1 %v3931_v30  ;;  %v3855_v32 = vor.u32 %v4600_v45, %v3852_v21  ;;  %v4588_v30 = vld [vmem:[#allocation4 + $0x84] sm:$0xf] }
  0xe0   :  { %v1378_v28 = vpop.f32.mrf.mxu2  ;;  %2441 = vmatpush.bf16.msrb.mxu2 %v4075_v50  ;;  %v3807_v62 = vor.u32 %v4588_v30, %v3804_v56  ;;  %v3868_v50 = vld [vmem:[#allocation4 + $0x110] sm:$0xf0]  ;;  %v3842_v56 = vld [vmem:[#allocation4 + $0xc8] sm:$0xf]  ;;  %v4652_v20 = vld [vmem:[#allocation4 + $0x284] sm:$0xf] }
  0xe1   :  { %2416 = vmatpush.bf16.msrb.mxu3 %v3803_v53  ;;  %v3823_v53 = vor.u32 %v4592_v47, %v3820_v48  ;;  %v3756_v28 = vld [vmem:[#allocation4 + $0x30] sm:$0xf0]  ;;  %v4603_v48 = vld [vmem:[#allocation4 + $0xf4] sm:$0xf0] }
  0xe2   :  { %v3859_v30 = vor.u32 %v4603_v48, %v3858_v43  ;;  %v4686_v43 = vld [vmem:[#allocation4 + $0x38c] sm:$0xf0]  ;;  %v3778_v48 = vld [vmem:[#allocation4 + $0x48] sm:$0xf] }
  0xe3   :  { %2430 = vmatpush.bf16.msrb.mxu1 %v3915_v63  ;;  %v4042_v63 = vld [vmem:[#allocation4 + $0x260] sm:$0xf]  ;;  %v4187_v44 = vor.u32 %v4686_v43, %v4186_v42  ;;  %v4696_v42 = vld [vmem:[#allocation4 + $0x3e4] sm:$0xf]  ;;  %v4236_v43 = vld [vmem:[#allocation4 + $0x3f0] sm:$0xf0] }
  0xe4   :  { %2442 = vmatpush.bf16.msrb.mxu2 %v4059_v58  ;;  %v4043_v8 = vor.u32 %v4650_v0, %v4042_v63  ;;  %v4660_v58 = vld [vmem:[#allocation4 + $0x2c4] sm:$0xf]  ;;  %v4698_v63 = vld [vmem:[#allocation4 + $0x3ec] sm:$0xf0] }
  0xe5   :  { %2417 = vmatpush.bf16.msrb.mxu3 %v3787_v59  ;;  %v4620_v59 = vld [vmem:[#allocation4 + $0x184] sm:$0xf] }
  0xe6   :  { %v3935_v37 = vor.u32 %v4620_v59, %v3932_v60  ;;  %v4092_v59 = vld [vmem:[#allocation4 + $0x2d0] sm:$0xf0]  ;;  %v4599_v60 = vld [vmem:[#allocation4 + $0xd4] sm:$0xf0] }
  0xe7   :  { %2431 = vmatpush.bf16.msrb.mxu1 %v3899_v10  ;;  %v3916_v10 = vld [vmem:[#allocation4 + $0x170] sm:$0xf0] }
  0xe8   :  { %2443 = vmatpush.bf16.msrb.mxu2 %v4043_v8  ;;  %v3919_v45 = vor.u32 %v4616_v9, %v3916_v10  ;;  %v4595_v9 = vld [vmem:[#allocation4 + $0xb4] sm:$0xf0] }
  0xe9   :  { %2418 = vmatpush.bf16.msrb.mxu3 %v3771_v5  ;;  %v3788_v5 = vld [vmem:[#allocation4 + $0x70] sm:$0xf0] }
  0xea   :  { %v1389_v61 = vpop.f32.mrf.mxu0  ;;  %v3791_v11 = vor.u32 %v4584_v4, %v3788_v5  ;;  %v3826_v4 = vld [vmem:[#allocation4 + $0xa8] sm:$0xf]  ;;  %v4656_v5 = vld [vmem:[#allocation4 + $0x2a4] sm:$0xf] }
  0xeb   :  { %2432 = vmatpush.bf16.msrb.mxu1 %v3883_v17  ;;  %v1390_v36 = vadd.f32 %v1389_v61, %v1377_v26  ;;  %v4095_v61 = vor.u32 %v4660_v58, %v4092_v59  ;;  %v3970_v26 = vld [vmem:[#allocation4 + $0x1c8] sm:$0xf] }
  0xec   :  { %v3762_v59 = vld [vmem:[#allocation4 + $0x28] sm:$0xf] }
  0xed   :  { %2419 = vmatpush.bf16.msrb.mxu3 %v3755_v13  ;;  %v1402_v3 = vpop.f32.mrf.mxu1  ;;  %v4646_v13 = vld [vmem:[#allocation4 + $0x24c] sm:$0xf0] }
  0xee   :  { %v4027_v17 = vor.u32 %v4646_v13, %v4026_v12  ;;  %v1403_v52 = vadd.f32 %v1402_v3, %v1390_v36  ;;  %v3843_v3 = vor.u32 %v4599_v60, %v3842_v56  ;;  %v4694_v12 = vld [vmem:[#allocation4 + $0x3cc] sm:$0xf0]  ;;  %v4623_v56 = vld [vmem:[#allocation4 + $0x194] sm:$0xf0]  ;;  %v4640_v60 = vld [vmem:[#allocation4 + $0x224] sm:$0xf] }
  0xef   :  { %2433 = vmatpush.bf16.msrb.mxu1 %v3867_v33  ;;  %v4608_v33 = vld [vmem:[#allocation4 + $0x124] sm:$0xf] }
  0xf0   :  { %2444 = vmatpush.bf16.msrb.mxu2 %v4027_v17 }
  0xf1   :  { %2420 = vmatpush.bf16.msrb.mxu3 %v3739_v27  ;;  %v4576_v27 = vld [vmem:[#allocation4 + $0x24] sm:$0xf] }
  0xf2   :  { %v1391_v21 = vpop.f32.mrf.mxu0  ;;  %v3759_v39 = vor.u32 %v4576_v27, %v3756_v28  ;;  %v4631_v27 = vld [vmem:[#allocation4 + $0x1d4] sm:$0xf0] }
  0xf3   :  { %2478 = vmatpush.bf16.msra.mxu1 %v3983_v40  ;;  %v1415_v18 = vpop.f32.mrf.mxu3  ;;  %v3740_v40 = vld [vmem:[#allocation4 + $0x10] sm:$0xf0]  ;;  %v3987_v21 = vor.u32 %v4635_v15, %v3986_v14  ;;  %v4575_v14 = vld [vmem:[#allocation4 + $0x14] sm:$0xf0]  ;;  %v4636_v15 = vld [vmem:[#allocation4 + $0x204] sm:$0xf] }
  0xf4   :  { %2421 = vmatmul.bf16.vlgmr.msrb.gmra.mxu3 %v4931_v51  ;;  %v1416_v54 = vadd.f32 %v1415_v18, %v1403_v52  ;;  %v3827_v18 = vor.u32 %v4595_v9, %v3826_v4  ;;  %v4583_v52 = vld [vmem:[#allocation4 + $0x54] sm:$0xf0]  ;;  %v4154_v4 = vld [vmem:[#allocation4 + $0x340] sm:$0xf] }
  0xf5   :  { %2465 = vmatpush.bf16.msra.mxu3 %v3855_v32  ;;  %v1404_v29 = vpop.f32.mrf.mxu1  ;;  %v4011_v32 = vor.u32 %v4642_v7, %v4010_v24  ;;  %v4690_v24 = vld [vmem:[#allocation4 + $0x3ac] sm:$0xf0]  ;;  %v3779_v58 = vor.u32 %v4583_v52, %v3778_v48  ;;  %v3828_v52 = vld [vmem:[#allocation4 + $0xb8] sm:$0xf0] }
  0xf7   :  { %2479 = vmatpush.bf16.msra.mxu1 %v3967_v49  ;;  %2445 = vmatpush.bf16.msrb.mxu2 %v4011_v32  ;;  %v4604_v49 = vld [vmem:[#allocation4 + $0x104] sm:$0xf]  ;;  %v3794_v32 = vld [vmem:[#allocation4 + $0x68] sm:$0xf] }
  0xf8   :  { %v1428_v22 = vpop.f32.mrf.mxu2 }
  0xf9   :  { %2466 = vmatpush.bf16.msra.mxu3 %v3839_v16  ;;  %v3887_v16 = vor.u32 %v4608_v33, %v3884_v34  ;;  %v1429_v1 = vadd.f32 %v1428_v22, %v1416_v54  ;;  %v4060_v22 = vld [vmem:[#allocation4 + $0x290] sm:$0xf0]  ;;  %v4648_v33 = vld [vmem:[#allocation4 + $0x264] sm:$0xf]  ;;  %v4682_v54 = vld [vmem:[#allocation4 + $0x36c] sm:$0xf0] }
  0xfa   :  { %v4063_v28 = vor.u32 %v4652_v20, %v4060_v22  ;;  %v4044_v34 = vld [vmem:[#allocation4 + $0x270] sm:$0xf0]  ;;  %v4674_v20 = vld [vmem:[#allocation4 + $0x32c] sm:$0xf0]  ;;  %v4601_v22 = vld [vmem:[#allocation4 + $0xec] sm:$0xf] }
  0xfb   :  { %2480 = vmatpush.bf16.msra.mxu1 %v3951_v35  ;;  %v1417_v47 = vpop.f32.mrf.mxu3  ;;  %2446 = vmatpush.bf16.msrb.mxu2 %v3995_v6  ;;  %v3871_v35 = vor.u32 %v4604_v49, %v3868_v50  ;;  %v4047_v41 = vor.u32 %v4648_v33, %v4044_v34  ;;  %v4627_v6 = vld [vmem:[#allocation4 + $0x1b4] sm:$0xf0]  ;;  %v4644_v49 = vld [vmem:[#allocation4 + $0x244] sm:$0xf]  ;;  %v4028_v50 = vld [vmem:[#allocation4 + $0x250] sm:$0xf0] }
  0xfd   :  { %2467 = vmatpush.bf16.msra.mxu3 %v3823_v53  ;;  %v3743_v53 = vor.u32 %v4572_v38, %v3740_v40  ;;  %v4587_v40 = vld [vmem:[#allocation4 + $0x74] sm:$0xf0] }
  0xfe   :  { %v3795_v47 = vor.u32 %v4587_v40, %v3794_v32  ;;  %v4597_v32 = vld [vmem:[#allocation4 + $0xcc] sm:$0xf]  ;;  %v3844_v40 = vld [vmem:[#allocation4 + $0xd8] sm:$0xf0] }
  0xff   :  { %2481 = vmatpush.bf16.msra.mxu1 %v3935_v37  ;;  %2491 = vmatpush.bf16.msra.mxu2 %v4111_v57  ;;  %v4076_v37 = vld [vmem:[#allocation4 + $0x2b0] sm:$0xf0]  ;;  %v3847_v48 = vor.u32 %v4597_v32, %v3844_v40  ;;  %v3764_v40 = vld [vmem:[#allocation4 + $0x38] sm:$0xf0] }
 0x100   :  { %v1430_v25 = vpop.f32.mrf.mxu2  ;;  %v4079_v10 = vor.u32 %v4656_v5, %v4076_v37  ;;  %v4678_v5 = vld [vmem:[#allocation4 + $0x34c] sm:$0xf0]  ;;  %v3922_v37 = vld [vmem:[#allocation4 + $0x168] sm:$0xf] }
 0x101   :  { %2468 = vmatpush.bf16.msra.mxu3 %v3807_v62  ;;  %v4234_v62 = vld [vmem:[#allocation4 + $0x3e0] sm:$0xf]  ;;  %v4155_v9 = vor.u32 %v4678_v5, %v4154_v4  ;;  %v4629_v5 = vld [vmem:[#allocation4 + $0x1cc] sm:$0xf] }
 0x102   :  { %v4235_v0 = vor.u32 %v4698_v63, %v4234_v62  ;;  %v4170_v25 = vld [vmem:[#allocation4 + $0x360] sm:$0xf] }
 0x103   :  { %2482 = vmatpush.bf16.msra.mxu1 %v3919_v45  ;;  %2492 = vmatpush.bf16.msra.mxu2 %v4095_v61  ;;  %v1441_v8 = vpop.f32.mrf.mxu3  ;;  %v3810_v45 = vld [vmem:[#allocation4 + $0x88] sm:$0xf]  ;;  %v4012_v61 = vld [vmem:[#allocation4 + $0x230] sm:$0xf0] }
 0x104   :  { %2452 = vmatpush.bf16.msrb.mxu0 %v4235_v0  ;;  %v1442_v13 = vadd.f32 %v1441_v8, %v1429_v1  ;;  %v3811_v29 = vor.u32 %v4591_v19, %v3810_v45  ;;  %v4579_v1 = vld [vmem:[#allocation4 + $0x34] sm:$0xf0]  ;;  %v4138_v19 = vld [vmem:[#allocation4 + $0x320] sm:$0xf] }
 0x105   :  { %2469 = vmatpush.bf16.msra.mxu3 %v3791_v11  ;;  %v4218_v11 = vld [vmem:[#allocation4 + $0x3c0] sm:$0xf]  ;;  %v4619_v8 = vld [vmem:[#allocation4 + $0x174] sm:$0xf0] }
 0x106   :  { %v4219_v55 = vor.u32 %v4694_v12, %v4218_v11  ;;  %v1628_v17 = vmax.f32 %v1442_v13, 0.0  ;;  %v3746_v11 = vld [vmem:[#allocation4 + $0x8] sm:$0xf]  ;;  %v3763_v13 = vor.u32 %v4579_v1, %v3762_v59  ;;  %v3923_v45 = vor.u32 %v4619_v8, %v3922_v37  ;;  %v4688_v1 = vld [vmem:[#allocation4 + $0x3a4] sm:$0xf] }
 0x107   :  { %2483 = vmatpush.bf16.msra.mxu1 %v3903_v31  ;;  %2493 = vmatpush.bf16.msra.mxu2 %v4079_v10 }
 0x108   :  { %2453 = vmatpush.bf16.msrb.mxu0 %v4219_v55  ;;  %v4938_v7 = vpack.c.bf16 %v1628_v17, %v1628_v17  ;;  %v3996_v55 = vld [vmem:[#allocation4 + $0x210] sm:$0xf0]  ;;  %v3906_v17 = vld [vmem:[#allocation4 + $0x148] sm:$0xf] }
 0x109   :  { %2470 = vmatpush.bf16.msra.mxu3 %v3775_v23  ;;  %v4202_v23 = vld [vmem:[#allocation4 + $0x3a0] sm:$0xf] }
 0x10a   :  { %v4203_v31 = vor.u32 %v4690_v24, %v4202_v23  ;;  %2434 = vmatmul.bf16.vlgmr.msrb.gmra.mxu1 %v4938_v7  ;;  %v4941_v38 = vpop.f32.mrf.mxu0  ;;  %v3860_v23 = vld [vmem:[#allocation4 + $0xf8] sm:$0xf0]  ;;  %v4139_v24 = vor.u32 %v4674_v20, %v4138_v19  ;;  %v4581_v19 = vld [vmem:[#allocation4 + $0x4c] sm:$0xf] }
 0x10b   :  { %2484 = vmatpush.bf16.msra.mxu1 %v3887_v16  ;;  %v1443_v36 = vpop.f32.mrf.mxu3  ;;  %2494 = vmatpush.bf16.msra.mxu2 %v4063_v28  ;;  %v3954_v16 = vld [vmem:[#allocation4 + $0x1a8] sm:$0xf]  ;;  %v4611_v28 = vld [vmem:[#allocation4 + $0x134] sm:$0xf0] }
 0x10c   :  { %2454 = vmatpush.bf16.msrb.mxu0 %v4203_v31  ;;  %v3955_v57 = vor.u32 %v4627_v6, %v3954_v16  ;;  %v4122_v36 = vld [vmem:[#allocation4 + $0x300] sm:$0xf]  ;;  %v273_v16 = vperm.slane %v4911_v2, 2 }
 0x10d   :  { %2471 = vmatpush.bf16.msra.mxu3 %v3759_v39  ;;  %v3971_v39 = vor.u32 %v4631_v27, %v3970_v26  ;;  %v4943_v46 = vpop.f32.mrf.mxu1  ;;  %v3747_v26 = vor.u32 %v4575_v14, %v3746_v11  ;;  %v3890_v27 = vld [vmem:[#allocation4 + $0x128] sm:$0xf]  ;;  %v4585_v11 = vld [vmem:[#allocation4 + $0x6c] sm:$0xf]  ;;  %v4684_v14 = vld [vmem:[#allocation4 + $0x384] sm:$0xf] }
 0x10f   :  { %2485 = vmatpush.bf16.msra.mxu1 %v3871_v35  ;;  %2495 = vmatpush.bf16.msra.mxu2 %v4047_v41  ;;  %v4171_v35 = vor.u32 %v4682_v54, %v4170_v25  ;;  %v4220_v25 = vld [vmem:[#allocation4 + $0x3d0] sm:$0xf0]  ;;  %v1455_v54 = vadd.f32 %v4943_v46, %v273_v16  ;;  %v3972_v46 = vld [vmem:[#allocation4 + $0x1d8] sm:$0xf0]  ;;  %v4617_v16 = vld [vmem:[#allocation4 + $0x16c] sm:$0xf] }
 0x110   :  { %2455 = vmatpush.bf16.msrb.mxu0 %v4187_v44  ;;  %v4239_v44 = vor.u32 %v4696_v42, %v4236_v43  ;;  %v4156_v42 = vld [vmem:[#allocation4 + $0x350] sm:$0xf0] }
 0x111   :  { %2472 = vmatpush.bf16.msra.mxu3 %v3743_v53  ;;  %v4031_v53 = vor.u32 %v4644_v49, %v4028_v50  ;;  %v3874_v49 = vld [vmem:[#allocation4 + $0x108] sm:$0xf]  ;;  %v4607_v50 = vld [vmem:[#allocation4 + $0x114] sm:$0xf0] }
 0x112   :  { %v1482_v63 = vpop.f32.mrf.mxu0 }
 0x113   :  { %2530 = vmatpush.bf16.msrb.mxu1 %v3987_v21  ;;  %2496 = vmatpush.bf16.msra.mxu2 %v4031_v53  ;;  %v4615_v21 = vld [vmem:[#allocation4 + $0x154] sm:$0xf0]  ;;  %v4692_v53 = vld [vmem:[#allocation4 + $0x3c4] sm:$0xf] }
 0x114   :  { %2473 = vmatmul.bf16.vlgmr.msra.gmra.mxu3 %v4931_v51  ;;  %2456 = vmatpush.bf16.msrb.mxu0 %v4171_v35  ;;  %v3907_v31 = vor.u32 %v4615_v21, %v3906_v17  ;;  %v4223_v35 = vor.u32 %v4692_v53, %v4220_v25  ;;  %v3956_v17 = vld [vmem:[#allocation4 + $0x1b8] sm:$0xf0]  ;;  %v4672_v25 = vld [vmem:[#allocation4 + $0x324] sm:$0xf] }
 0x115   :  { %2517 = vmatpush.bf16.msrb.mxu3 %v3859_v30  ;;  %v3938_v30 = vld [vmem:[#allocation4 + $0x188] sm:$0xf]  ;;  %v1456_v12 = vpop.f32.mrf.mxu1  ;;  %v3780_v21 = vld [vmem:[#allocation4 + $0x58] sm:$0xf0] }
 0x116   :  { %v3939_v0 = vor.u32 %v4623_v56, %v3938_v30  ;;  %v4633_v30 = vld [vmem:[#allocation4 + $0x1ec] sm:$0xf]  ;;  %v3988_v56 = vld [vmem:[#allocation4 + $0x1f8] sm:$0xf0]  ;;  %v3975_v12 = vor.u32 %v4629_v5, %v3972_v46  ;;  %v4124_v5 = vld [vmem:[#allocation4 + $0x310] sm:$0xf0] }
 0x117   :  { %2531 = vmatpush.bf16.msrb.mxu1 %v3971_v39  ;;  %v4945_v62 = vpop.f32.mrf.mxu3  ;;  %v4670_v39 = vld [vmem:[#allocation4 + $0x30c] sm:$0xf0]  ;;  %v3991_v63 = vor.u32 %v4633_v30, %v3988_v56  ;;  %v3748_v53 = vld [vmem:[#allocation4 + $0x18] sm:$0xf0]  ;;  %v4613_v56 = vld [vmem:[#allocation4 + $0x14c] sm:$0xf] }
 0x118   :  { %v4947_v10 = vpop.f32.mrf.mxu2  ;;  %2457 = vmatpush.bf16.msrb.mxu0 %v4155_v9  ;;  %v4123_v41 = vor.u32 %v4670_v39, %v4122_v36  ;;  %v1468_v4 = vadd.f32 %v4945_v62, %v1455_v54  ;;  %v4140_v54 = vld [vmem:[#allocation4 + $0x330] sm:$0xf0]  ;;  %v4609_v46 = vld [vmem:[#allocation4 + $0x12c] sm:$0xf] }
 0x119   :  { %2518 = vmatpush.bf16.msrb.mxu3 %v3843_v3  ;;  %v4015_v3 = vor.u32 %v4640_v60, %v4012_v61  ;;  %v4589_v60 = vld [vmem:[#allocation4 + $0x8c] sm:$0xf] }
 0x11a   :  { %2486 = vmatmul.bf16.vlgmr.msra.gmra.mxu1 %v4938_v7  ;;  %v4950_v34 = vpop.f32.mrf.mxu0 }
 0x11b   :  { %2532 = vmatpush.bf16.msrb.mxu1 %v3955_v57  ;;  %2497 = vmatpush.bf16.msra.mxu2 %v4015_v3  ;;  %v4593_v57 = vld [vmem:[#allocation4 + $0xac] sm:$0xf]  ;;  %v4204_v3 = vld [vmem:[#allocation4 + $0x3b0] sm:$0xf0] }
 0x11c   :  { %2458 = vmatpush.bf16.msrb.mxu0 %v4139_v24  ;;  %v3831_v59 = vor.u32 %v4593_v57, %v3828_v52  ;;  %v4207_v37 = vor.u32 %v4688_v1, %v4204_v3  ;;  %v4573_v57 = vld [vmem:[#allocation4 + $0xc] sm:$0xf] }
 0x11d   :  { %2519 = vmatpush.bf16.msrb.mxu3 %v3827_v18  ;;  %v3999_v18 = vor.u32 %v4636_v15, %v3996_v55  ;;  %v4188_v15 = vld [vmem:[#allocation4 + $0x390] sm:$0xf0]  ;;  %v1481_v55 = vadd.f32 %v4941_v38, %v1468_v4  ;;  %v4668_v4 = vld [vmem:[#allocation4 + $0x304] sm:$0xf] }
 0x11e   :  { %v4191_v62 = vor.u32 %v4684_v14, %v4188_v15  ;;  %v4605_v15 = vld [vmem:[#allocation4 + $0x10c] sm:$0xf] }
 0x11f   :  { %2533 = vmatpush.bf16.msrb.mxu1 %v3939_v0  ;;  %v1469_v33 = vpop.f32.mrf.mxu3  ;;  %2498 = vmatpush.bf16.msra.mxu2 %v3999_v18  ;;  %v3812_v0 = vld [vmem:[#allocation4 + $0x98] sm:$0xf0]  ;;  %v1494_v24 = vadd.f32 %v4947_v10, %v1481_v55 }
 0x120   :  { %v1495_v6 = vpop.f32.mrf.mxu2  ;;  %2459 = vmatpush.bf16.msrb.mxu0 %v4123_v41  ;;  %v3815_v9 = vor.u32 %v4589_v60, %v3812_v0  ;;  %v4577_v33 = vld [vmem:[#allocation4 + $0x2c] sm:$0xf]  ;;  %v4676_v41 = vld [vmem:[#allocation4 + $0x344] sm:$0xf]  ;;  %v3924_v10 = vld [vmem:[#allocation4 + $0x178] sm:$0xf0] }
 0x121   :  { %2520 = vmatpush.bf16.msrb.mxu3 %v3811_v29  ;;  %v3863_v29 = vor.u32 %v4601_v22, %v3860_v23  ;;  %v4680_v22 = vld [vmem:[#allocation4 + $0x364] sm:$0xf]  ;;  %v4172_v23 = vld [vmem:[#allocation4 + $0x370] sm:$0xf0]  ;;  %v3927_v52 = vor.u32 %v4617_v16, %v3924_v10  ;;  %v4663_v0 = vld [vmem:[#allocation4 + $0x2d4] sm:$0xf0] }
 0x122   :  { %v1534_v61 = vpop.f32.mrf.mxu0  ;;  %v4175_v38 = vor.u32 %v4680_v22, %v4172_v23  ;;  %v3876_v55 = vld [vmem:[#allocation4 + $0x118] sm:$0xf0]  ;;  %v4651_v22 = vld [vmem:[#allocation4 + $0x274] sm:$0xf0]  ;;  %v4665_v10 = vld [vmem:[#allocation4 + $0x2ec] sm:$0xf] }
 0x123   :  { %2534 = vmatpush.bf16.msrb.mxu1 %v3923_v45  ;;  %v4625_v45 = vld [vmem:[#allocation4 + $0x1ac] sm:$0xf] }
 0x124   :  { %2504 = vmatpush.bf16.msra.mxu0 %v4239_v44  ;;  %v3959_v20 = vor.u32 %v4625_v45, %v3956_v17  ;;  %v4159_v44 = vor.u32 %v4676_v41, %v4156_v42  ;;  %v4066_v17 = vld [vmem:[#allocation4 + $0x288] sm:$0xf] }
 0x125   :  { %2521 = vmatpush.bf16.msrb.mxu3 %v3795_v47  ;;  %v3891_v47 = vor.u32 %v4611_v28, %v3890_v27  ;;  %v3940_v27 = vld [vmem:[#allocation4 + $0x198] sm:$0xf0] }
 0x127   :  { %2535 = vmatpush.bf16.msrb.mxu1 %v3907_v31 }
 0x128   :  { %2505 = vmatpush.bf16.msra.mxu0 %v4223_v35  ;;  %v3908_v35 = vld [vmem:[#allocation4 + $0x158] sm:$0xf0] }
 0x129   :  { %2522 = vmatpush.bf16.msrb.mxu3 %v3779_v58  ;;  %v3875_v58 = vor.u32 %v4607_v50, %v3874_v49  ;;  %v4114_v49 = vld [vmem:[#allocation4 + $0x2e8] sm:$0xf]  ;;  %v4667_v50 = vld [vmem:[#allocation4 + $0x2f4] sm:$0xf0]  ;;  %v3911_v1 = vor.u32 %v4613_v56, %v3908_v35 }
 0x12a   :  { %v4115_v60 = vor.u32 %v4667_v50, %v4114_v49  ;;  %v4661_v50 = vld [vmem:[#allocation4 + $0x2cc] sm:$0xf] }
 0x12b   :  { %2536 = vmatpush.bf16.msrb.mxu1 %v3891_v47  ;;  %v1506_v8 = vpop.f32.mrf.mxu1 }
 0x12c   :  { %2506 = vmatpush.bf16.msra.mxu0 %v4207_v37  ;;  %v1507_v31 = vadd.f32 %v1506_v8, %v1494_v24  ;;  %v3892_v37 = vld [vmem:[#allocation4 + $0x138] sm:$0xf0] }
 0x12d   :  { %2523 = vmatpush.bf16.msrb.mxu3 %v3763_v13  ;;  %v3796_v13 = vld [vmem:[#allocation4 + $0x78] sm:$0xf0]  ;;  %v3895_v14 = vor.u32 %v4609_v46, %v3892_v37  ;;  %v4210_v37 = vld [vmem:[#allocation4 + $0x3a8] sm:$0xf] }
 0x12e   :  { %v3799_v18 = vor.u32 %v4585_v11, %v3796_v13  ;;  %v4659_v13 = vld [vmem:[#allocation4 + $0x2b4] sm:$0xf0]  ;;  %v4068_v46 = vld [vmem:[#allocation4 + $0x298] sm:$0xf0] }
 0x12f   :  { %2537 = vmatpush.bf16.msrb.mxu1 %v3875_v58  ;;  %v4959_v28 = vpop.f32.mrf.mxu0 }
 0x130   :  { %2507 = vmatpush.bf16.msra.mxu0 %v4191_v62  ;;  %v4655_v62 = vld [vmem:[#allocation4 + $0x294] sm:$0xf0] }
 0x131   :  { %2524 = vmatpush.bf16.msrb.mxu3 %v3747_v26  ;;  %v4621_v26 = vld [vmem:[#allocation4 + $0x18c] sm:$0xf] }
 0x132   :  { %2538 = vmatmul.bf16.vlgmr.msrb.gmra.mxu1 %v4938_v7  ;;  %v3943_v39 = vor.u32 %v4621_v26, %v3940_v27  ;;  %v4034_v27 = vld [vmem:[#allocation4 + $0x248] sm:$0xf] }
 0x133   :  { %2582 = vmatpush.bf16.msra.mxu1 %v3991_v63  ;;  %v1508_v32 = vpop.f32.mrf.mxu1  ;;  %v4098_v63 = vld [vmem:[#allocation4 + $0x2c8] sm:$0xf] }
 0x134   :  { %2525 = vmatmul.bf16.vlgmr.msrb.gmra.mxu3 %v4931_v51  ;;  %2508 = vmatpush.bf16.msra.mxu0 %v4175_v38  ;;  %v4099_v11 = vor.u32 %v4663_v0, %v4098_v63  ;;  %v4643_v32 = vld [vmem:[#allocation4 + $0x234] sm:$0xf0]  ;;  %v4226_v63 = vld [vmem:[#allocation4 + $0x3c8] sm:$0xf] }
 0x135   :  { %2569 = vmatpush.bf16.msra.mxu3 %v3863_v29  ;;  %v3783_v29 = vor.u32 %v4581_v19, %v3780_v21  ;;  %v3879_v19 = vor.u32 %v4605_v15, %v3876_v55  ;;  %v4050_v21 = vld [vmem:[#allocation4 + $0x268] sm:$0xf]  ;;  %v4695_v0 = vld [vmem:[#allocation4 + $0x3d4] sm:$0xf0] }
 0x136   :  { %v4051_v26 = vor.u32 %v4651_v22, %v4050_v21  ;;  %v4687_v15 = vld [vmem:[#allocation4 + $0x394] sm:$0xf0]  ;;  %v4641_v22 = vld [vmem:[#allocation4 + $0x22c] sm:$0xf] }
 0x137   :  { %2583 = vmatpush.bf16.msra.mxu1 %v3975_v12  ;;  %v1519_v36 = vpop.f32.mrf.mxu3  ;;  %v1560_v58 = vpop.f32.mrf.mxu0  ;;  %v4082_v12 = vld [vmem:[#allocation4 + $0x2a8] sm:$0xf] }
 0x138   :  { %v1520_v43 = vadd.f32 %v1519_v36, %v1507_v31  ;;  %v1545_v6 = vpop.f32.mrf.mxu2  ;;  %2509 = vmatpush.bf16.msra.mxu0 %v4159_v44  ;;  %v4083_v45 = vor.u32 %v4659_v13, %v4082_v12  ;;  %v4649_v12 = vld [vmem:[#allocation4 + $0x26c] sm:$0xf]  ;;  %v4052_v13 = vld [vmem:[#allocation4 + $0x278] sm:$0xf0] }
 0x139   :  { %2570 = vmatpush.bf16.msra.mxu3 %v3847_v48  ;;  %v3767_v48 = vor.u32 %v4577_v33, %v3764_v40  ;;  %v4055_v55 = vor.u32 %v4649_v12, %v4052_v13 }
 0x13a   :  { %v1533_v47 = vadd.f32 %v4950_v34, %v1520_v43  ;;  %v3751_v34 = vor.u32 %v4573_v57, %v3748_v53  ;;  %v4002_v43 = vld [vmem:[#allocation4 + $0x208] sm:$0xf]  ;;  %v4100_v57 = vld [vmem:[#allocation4 + $0x2d8] sm:$0xf0] }
 0x13b   :  { %2584 = vmatpush.bf16.msra.mxu1 %v3959_v20  ;;  %v4067_v20 = vor.u32 %v4655_v62, %v4066_v17  ;;  %v4103_v35 = vor.u32 %v4661_v50, %v4100_v57  ;;  %v4645_v17 = vld [vmem:[#allocation4 + $0x24c] sm:$0xf]  ;;  %v4036_v62 = vld [vmem:[#allocation4 + $0x258] sm:$0xf0]  ;;  %v4980_v57 = vld [vmem:[%s5105_s4] sm:$0xf] }
 0x13c   :  { %v1629_v30 = vmax.f32 %v1533_v47, 0.0  ;;  %v4196_v50 = vld [vmem:[#allocation4 + $0x398] sm:$0xf0] }
 0x13d   :  { %2571 = vmatpush.bf16.msra.mxu3 %v3831_v59  ;;  %v4143_v59 = vor.u32 %v4672_v25, %v4140_v54  ;;  %v4242_v25 = vld [vmem:[#allocation4 + $0x3e8] sm:$0xf]  ;;  %v4699_v54 = vld [vmem:[#allocation4 + $0x3f4] sm:$0xf0] }
 0x13e   :  { %v4962_v61 = vpack.c.bf16 %v1629_v30, %v1629_v30  ;;  %v4243_v58 = vor.u32 %v4699_v54, %v4242_v25  ;;  %v4180_v25 = vld [vmem:[#allocation4 + $0x378] sm:$0xf0] }
 0x13f   :  { %2585 = vmatpush.bf16.msra.mxu1 %v3943_v39  ;;  %v1521_v3 = vpop.f32.mrf.mxu3  ;;  %2510 = vmatpush.bf16.msra.mxu0 %v4143_v59  ;;  %v4657_v59 = vld [vmem:[#allocation4 + $0x2ac] sm:$0xf] }
 0x140   :  { %2447 = vmatmul.bf16.vlgmr.msrb.gmra.mxu2 %v4962_v61  ;;  %v1547_v8 = vpop.f32.mrf.mxu2 }
 0x141   :  { %2572 = vmatpush.bf16.msra.mxu3 %v3815_v9  ;;  %v4127_v9 = vor.u32 %v4668_v4, %v4124_v5  ;;  %2543 = vmatpush.bf16.msrb.mxu2 %v4115_v60  ;;  %v4084_v60 = vld [vmem:[#allocation4 + $0x2b8] sm:$0xf0]  ;;  %v4227_v4 = vor.u32 %v4695_v0, %v4226_v63  ;;  %v4653_v5 = vld [vmem:[#allocation4 + $0x28c] sm:$0xf]  ;;  %v4691_v8 = vld [vmem:[#allocation4 + $0x3b4] sm:$0xf0] }
 0x142   :  { %v4673_v0 = vld [vmem:[#allocation4 + $0x32c] sm:$0xf] }
 0x143   :  { %2586 = vmatpush.bf16.msra.mxu1 %v3927_v52  ;;  %2511 = vmatpush.bf16.msra.mxu0 %v4127_v9  ;;  %v4071_v9 = vor.u32 %v4653_v5, %v4068_v46  ;;  %v4132_v5 = vld [vmem:[#allocation4 + $0x318] sm:$0xf0] }
 0x145   :  { %2573 = vmatpush.bf16.msra.mxu3 %v3799_v18  ;;  %2544 = vmatpush.bf16.msrb.mxu2 %v4099_v11  ;;  %v274_v18 = vperm.slane %v4911_v2, 3  ;;  %v4211_v11 = vor.u32 %v4691_v8, %v4210_v37 }
 0x147   :  { %2587 = vmatpush.bf16.msra.mxu1 %v3911_v1  ;;  %v1546_v23 = vadd.f32 %v1545_v6, %v274_v18  ;;  %v4116_v6 = vld [vmem:[#allocation4 + $0x2f8] sm:$0xf0]  ;;  %v4087_v1 = vor.u32 %v4657_v59, %v4084_v60  ;;  %v4178_v18 = vld [vmem:[#allocation4 + $0x368] sm:$0xf] }
 0x149   :  { %2574 = vmatpush.bf16.msra.mxu3 %v3783_v29  ;;  %2545 = vmatpush.bf16.msrb.mxu2 %v4083_v45  ;;  %v1559_v38 = vadd.f32 %v4959_v28, %v1546_v23  ;;  %v4018_v29 = vld [vmem:[#allocation4 + $0x228] sm:$0xf]  ;;  %v4020_v23 = vld [vmem:[#allocation4 + $0x238] sm:$0xf0] }
 0x14a   :  { %v4019_v42 = vor.u32 %v4643_v32, %v4018_v29  ;;  %v4146_v29 = vld [vmem:[#allocation4 + $0x328] sm:$0xf]  ;;  %v4675_v32 = vld [vmem:[#allocation4 + $0x334] sm:$0xf0] }
 0x14b   :  { %2588 = vmatpush.bf16.msra.mxu1 %v3895_v14  ;;  %v1571_v24 = vpop.f32.mrf.mxu1  ;;  %v4194_v14 = vld [vmem:[#allocation4 + $0x388] sm:$0xf] }
 0x14c   :  { %v1572_v33 = vadd.f32 %v1571_v24, %v1559_v38  ;;  %v4195_v45 = vor.u32 %v4687_v15, %v4194_v14  ;;  %v4162_v24 = vld [vmem:[#allocation4 + $0x348] sm:$0xf]  ;;  %v4707_v14 = vld [vmem:[%s5106_s5 + $0x38] sm:$0xff] }
 0x14d   :  { %2575 = vmatpush.bf16.msra.mxu3 %v3767_v48  ;;  %2546 = vmatpush.bf16.msrb.mxu2 %v4067_v20  ;;  %v4119_v48 = vor.u32 %v4665_v10, %v4116_v6  ;;  %v4039_v20 = vor.u32 %v4645_v17, %v4036_v62  ;;  %v4693_v10 = vld [vmem:[#allocation4 + $0x3cc] sm:$0xf]  ;;  %v4228_v6 = vld [vmem:[#allocation4 + $0x3d8] sm:$0xf0] }
 0x14f   :  { %2589 = vmatpush.bf16.msra.mxu1 %v3879_v19  ;;  %v1610_v2 = vpop.f32.mrf.mxu0  ;;  %v4683_v19 = vld [vmem:[#allocation4 + $0x374] sm:$0xf0] }
 0x150   :  { %2499 = vmatmul.bf16.vlgmr.msra.gmra.mxu2 %v4962_v61  ;;  %v4179_v21 = vor.u32 %v4683_v19, %v4178_v18  ;;  %v4705_v18 = vld [vmem:[%s5106_s5 + $0x28] sm:$0xff] }
 0x151   :  { %2576 = vmatpush.bf16.msra.mxu3 %v3751_v34  ;;  %2547 = vmatpush.bf16.msrb.mxu2 %v4051_v26  ;;  %v4679_v26 = vld [vmem:[#allocation4 + $0x354] sm:$0xf0] }
 0x152   :  { %2590 = vmatmul.bf16.vlgmr.msra.gmra.mxu1 %v4938_v7  ;;  %v4639_v7 = vld [vmem:[#allocation4 + $0x214] sm:$0xf0]  ;;  %v4163_v38 = vor.u32 %v4679_v26, %v4162_v24  ;;  %v4702_v26 = vld [vmem:[%s5106_s5 + $0x10] sm:$0xff] }
 0x153   :  { %v1573_v36 = vpop.f32.mrf.mxu1  ;;  %v4003_v47 = vor.u32 %v4639_v7, %v4002_v43  ;;  %v4244_v43 = vld [vmem:[#allocation4 + $0x3f8] sm:$0xf0] }
 0x154   :  { %2577 = vmatmul.bf16.vlgmr.msra.gmra.mxu3 %v4931_v51  ;;  %v4647_v51 = vld [vmem:[#allocation4 + $0x254] sm:$0xf0]  ;;  %v4147_v36 = vor.u32 %v4675_v32, %v4146_v29  ;;  %v1768_v32 = vperm.slane %v4980_v57, 3 }
 0x155   :  { %v4035_v31 = vor.u32 %v4647_v51, %v4034_v27  ;;  %v4023_v51 = vor.u32 %v4641_v22, %v4020_v23  ;;  %2889 = vmatpush.bf16.msrb.mxu3 %v4707_v14  ;;  %v4703_v22 = vld [vmem:[%s5106_s5 + $0x18] sm:$0xff] }
 0x156   :  { %v4715_v23 = vld [vmem:[%s5106_s5 + $0x78] sm:$0xff] }
 0x157   :  { %v1584_v39 = vpop.f32.mrf.mxu3  ;;  %2548 = vmatpush.bf16.msrb.mxu2 %v4035_v31  ;;  %v1612_v28 = vpop.f32.mrf.mxu0  ;;  %v4004_v31 = vld [vmem:[#allocation4 + $0x218] sm:$0xf0]  ;;  %2902 = vmatpush.bf16.msrb.mxu1 %v4715_v23 }
 0x158   :  { %v1585_v40 = vadd.f32 %v1584_v39, %v1572_v33  ;;  %v1597_v41 = vpop.f32.mrf.mxu2  ;;  %v4130_v39 = vld [vmem:[#allocation4 + $0x308] sm:$0xf]  ;;  %v4231_v28 = vor.u32 %v4693_v10, %v4228_v6 }
 0x159   :  { %v4709_v10 = vld [vmem:[%s5106_s5 + $0x48] sm:$0xff] }
 0x15a   :  { %v1598_v16 = vadd.f32 %v1597_v41, %v1585_v40  ;;  %v4671_v40 = vld [vmem:[#allocation4 + $0x314] sm:$0xf0]  ;;  %v4721_v6 = vld [vmem:[%s5106_s5 + $0xa8] sm:$0xff] }
 0x15b   :  { %2549 = vmatpush.bf16.msrb.mxu2 %v4019_v42  ;;  %v1623_v49 = vpop.f32.mrf.mxu1  ;;  %v4697_v42 = vld [vmem:[#allocation4 + $0x3ec] sm:$0xf]  ;;  %v4131_v7 = vor.u32 %v4671_v40, %v4130_v39 }
 0x15c   :  { %v1611_v44 = vadd.f32 %v1610_v2, %v1598_v16  ;;  %v4637_v2 = vld [vmem:[#allocation4 + $0x20c] sm:$0xf]  ;;  %v4247_v16 = vor.u32 %v4697_v42, %v4244_v43  ;;  %v4722_v42 = vld [vmem:[%s5106_s5 + $0xb0] sm:$0xff] }
 0x15d   :  { %v4007_v33 = vor.u32 %v4637_v2, %v4004_v31  ;;  %v4700_v2 = vld [vmem:[%s5106_s5] sm:$0xff] }
 0x15e   :  { %v1624_v52 = vadd.f32 %v1623_v49, %v1611_v44  ;;  %v4689_v44 = vld [vmem:[#allocation4 + $0x3ac] sm:$0xf]  ;;  %v4712_v31 = vld [vmem:[%s5106_s5 + $0x60] sm:$0xff] }
 0x15f   :  { %v1586_v53 = vpop.f32.mrf.mxu3  ;;  %2550 = vmatpush.bf16.msrb.mxu2 %v4003_v47  ;;  %v4212_v47 = vld [vmem:[#allocation4 + $0x3b8] sm:$0xf0]  ;;  %v4685_v49 = vld [vmem:[#allocation4 + $0x38c] sm:$0xf] }
 0x160   :  { %v1599_v30 = vpop.f32.mrf.mxu2  ;;  %v1630_v56 = vmax.f32 %v1624_v52, 0.0  ;;  %v1765_v52 = vperm.slane %v4980_v57, 0  ;;  %v4681_v53 = vld [vmem:[#allocation4 + $0x36c] sm:$0xf] }
 0x161   :  { %v4183_v54 = vor.u32 %v4681_v53, %v4180_v25  ;;  %v4717_v53 = vld [vmem:[%s5106_s5 + $0x88] sm:$0xff] }
 0x162   :  { %v4970_v34 = vpack.c.bf16 %v1630_v56, %v1630_v56  ;;  %2551 = vmatmul.bf16.vlgmr.msrb.gmra.mxu2 %v4962_v61  ;;  %v4677_v56 = vld [vmem:[#allocation4 + $0x34c] sm:$0xf] }
 0x163   :  { %2595 = vmatpush.bf16.msra.mxu2 %v4119_v48  ;;  %v1625_v3 = vpop.f32.mrf.mxu1  ;;  %v4215_v48 = vor.u32 %v4689_v44, %v4212_v47  ;;  %v4708_v44 = vld [vmem:[%s5106_s5 + $0x40] sm:$0xff] }
 0x164   :  { %2460 = vmatmul.bf16.vlgmr.msrb.gmra.mxu0 %v4970_v34  ;;  %v4720_v47 = vld [vmem:[%s5106_s5 + $0xa0] sm:$0xff] }
 0x165   :  { %2556 = vmatpush.bf16.msrb.mxu0 %v4243_v58 }
 0x167   :  { %2596 = vmatpush.bf16.msra.mxu2 %v4103_v35  ;;  %v4164_v35 = vld [vmem:[#allocation4 + $0x358] sm:$0xf0] }
 0x168   :  { %v4167_v63 = vor.u32 %v4677_v56, %v4164_v35  ;;  %v4716_v56 = vld [vmem:[%s5106_s5 + $0x80] sm:$0xff]  ;;  %v4731_v35 = vld [vmem:[%s5106_s5 + $0xf8] sm:$0xff] }
 0x169   :  { %2557 = vmatpush.bf16.msrb.mxu0 %v4227_v4  ;;  %v4669_v4 = vld [vmem:[#allocation4 + $0x30c] sm:$0xf] }
 0x16a   :  { %v4135_v8 = vor.u32 %v4669_v4, %v4132_v5 }
 0x16b   :  { %2597 = vmatpush.bf16.msra.mxu2 %v4087_v1  ;;  %v4148_v1 = vld [vmem:[#allocation4 + $0x338] sm:$0xf0] }
 0x16c   :  { %v4151_v3 = vor.u32 %v4673_v0, %v4148_v1  ;;  %v4729_v0 = vld [vmem:[%s5106_s5 + $0xe8] sm:$0xff] }
 0x16d   :  { %2558 = vmatpush.bf16.msrb.mxu0 %v4211_v11 }
 0x16f   :  { %2598 = vmatpush.bf16.msra.mxu2 %v4071_v9  ;;  %v1766_v9 = vperm.slane %v4980_v57, 1 }
 0x171   :  { %2559 = vmatpush.bf16.msrb.mxu0 %v4195_v45  ;;  %v4706_v45 = vld [vmem:[%s5106_s5 + $0x30] sm:$0xff] }
 0x172   :  { %2890 = vmatpush.bf16.msrb.mxu3 %v4706_v45 }
 0x173   :  { %2599 = vmatpush.bf16.msra.mxu2 %v4055_v55  ;;  %v1767_v55 = vperm.slane %v4980_v57, 2  ;;  %v4718_v57 = vld [vmem:[%s5106_s5 + $0x90] sm:$0xff] }
 0x174   :  { %2512 = vmatmul.bf16.vlgmr.msra.gmra.mxu0 %v4970_v34 }
 0x175   :  { %2560 = vmatpush.bf16.msrb.mxu0 %v4179_v21 }
 0x176   :  { %2891 = vmatpush.bf16.msrb.mxu3 %v4705_v18 }
 0x177   :  { %v2422_v27 = vpop.f32.mrf.mxu3  ;;  %2600 = vmatpush.bf16.msra.mxu2 %v4039_v20  ;;  %v4704_v20 = vld [vmem:[%s5106_s5 + $0x20] sm:$0xff] }
 0x178   :  { %v2423_v30 = vadd.f32 %v2422_v27, %v1765_v52  ;;  %v4714_v27 = vld [vmem:[%s5106_s5 + $0x70] sm:$0xff] }
 0x179   :  { %2561 = vmatpush.bf16.msrb.mxu0 %v4163_v38  ;;  %2903 = vmatpush.bf16.msrb.mxu1 %v4714_v27  ;;  %v4713_v38 = vld [vmem:[%s5106_s5 + $0x68] sm:$0xff] }
 0x17a   :  { %2892 = vmatpush.bf16.msrb.mxu3 %v4704_v20 }
 0x17b   :  { %2601 = vmatpush.bf16.msra.mxu2 %v4023_v51  ;;  %v4701_v51 = vld [vmem:[%s5106_s5 + $0x8] sm:$0xff] }
 0x17d   :  { %2562 = vmatpush.bf16.msrb.mxu0 %v4147_v36  ;;  %2904 = vmatpush.bf16.msrb.mxu1 %v4713_v38  ;;  %v4723_v36 = vld [vmem:[%s5106_s5 + $0xb8] sm:$0xff] }
 0x17e   :  { %2893 = vmatpush.bf16.msrb.mxu3 %v4703_v22 }
 0x17f   :  { %v2424_v41 = vpop.f32.mrf.mxu3  ;;  %2602 = vmatpush.bf16.msra.mxu2 %v4007_v33  ;;  %v4711_v33 = vld [vmem:[%s5106_s5 + $0x58] sm:$0xff] }
 0x180   :  { %v4710_v41 = vld [vmem:[%s5106_s5 + $0x50] sm:$0xff] }
 0x181   :  { %2563 = vmatpush.bf16.msrb.mxu0 %v4131_v7  ;;  %2905 = vmatpush.bf16.msrb.mxu1 %v4712_v31 }
 0x182   :  { %2603 = vmatmul.bf16.vlgmr.msra.gmra.mxu2 %v4962_v61  ;;  %v4199_v61 = vor.u32 %v4685_v49, %v4196_v50  ;;  %2894 = vmatpush.bf16.msrb.mxu3 %v4702_v26  ;;  %v4719_v50 = vld [vmem:[%s5106_s5 + $0x98] sm:$0xff] }
 0x183   :  { %2915 = vmatpush.bf16.msrb.mxu2 %v4723_v36 }
 0x184   :  { %2564 = vmatmul.bf16.vlgmr.msrb.gmra.mxu0 %v4970_v34 }
 0x185   :  { %2608 = vmatpush.bf16.msra.mxu0 %v4247_v16  ;;  %2906 = vmatpush.bf16.msrb.mxu1 %v4711_v33 }
 0x186   :  { %2895 = vmatpush.bf16.msrb.mxu3 %v4701_v51 }
 0x187   :  { %v2435_v58 = vpop.f32.mrf.mxu1  ;;  %2916 = vmatpush.bf16.msrb.mxu2 %v4722_v42 }
 0x188   :  { %v4983_v60 = vadd.f32 %v2435_v58, %v2423_v30 }
 0x189   :  { %2609 = vmatpush.bf16.msra.mxu0 %v4231_v28  ;;  %2907 = vmatpush.bf16.msrb.mxu1 %v4710_v41 }
 0x18a   :  { %2896 = vmatpush.bf16.msrb.mxu3 %v4700_v2 }
 0x18b   :  { %2917 = vmatpush.bf16.msrb.mxu2 %v4721_v6 }
 0x18d   :  { %2610 = vmatpush.bf16.msra.mxu0 %v4215_v48  ;;  %2908 = vmatpush.bf16.msrb.mxu1 %v4709_v10 }
 0x18f   :  { %v2437_v46 = vpop.f32.mrf.mxu1  ;;  %2918 = vmatpush.bf16.msrb.mxu2 %v4720_v47 }
 0x191   :  { %2611 = vmatpush.bf16.msra.mxu0 %v4199_v61  ;;  %2909 = vmatpush.bf16.msrb.mxu1 %v4708_v44 }
 0x193   :  { %2919 = vmatpush.bf16.msrb.mxu2 %v4719_v50 }
 0x195   :  { %2612 = vmatpush.bf16.msra.mxu0 %v4183_v54 }
 0x197   :  { %v2474_v59 = vpop.f32.mrf.mxu3  ;;  %v2487_v12 = vpop.f32.mrf.mxu1  ;;  %2920 = vmatpush.bf16.msrb.mxu2 %v4718_v57 }
 0x198   :  { %v2475_v11 = vadd.f32 %v2474_v59, %v1766_v9 }
 0x199   :  { %2613 = vmatpush.bf16.msra.mxu0 %v4167_v63 }
 0x19a   :  { %v4986_v13 = vadd.f32 %v2487_v12, %v2475_v11  ;;  %v4726_v11 = vld [vmem:[%s5106_s5 + $0xd0] sm:$0xff] }
 0x19b   :  { %2921 = vmatpush.bf16.msrb.mxu2 %v4717_v53 }
 0x19d   :  { %2614 = vmatpush.bf16.msra.mxu0 %v4151_v3  ;;  %v4728_v3 = vld [vmem:[%s5106_s5 + $0xe0] sm:$0xff] }
 0x19f   :  { %v2476_v37 = vpop.f32.mrf.mxu3  ;;  %v2489_v15 = vpop.f32.mrf.mxu1  ;;  %2922 = vmatpush.bf16.msrb.mxu2 %v4716_v56 }
 0x1a0   :  { %v4727_v37 = vld [vmem:[%s5106_s5 + $0xd8] sm:$0xff]  ;;  %v4724_v15 = vld [vmem:[%s5106_s5 + $0xc0] sm:$0xff] }
 0x1a1   :  { %2615 = vmatpush.bf16.msra.mxu0 %v4135_v8 }
 0x1a4   :  { %2616 = vmatmul.bf16.vlgmr.msra.gmra.mxu0 %v4970_v34 }
 0x1a5   :  { %2928 = vmatpush.bf16.msrb.mxu0 %v4731_v35 }
 0x1af   :  { %v2539_v34 = vpop.f32.mrf.mxu1 }
 0x1b7   :  { %v2526_v17 = vpop.f32.mrf.mxu3  ;;  %v2541_v24 = vpop.f32.mrf.mxu1 }
 0x1b8   :  { %v2527_v62 = vadd.f32 %v2526_v17, %v1767_v55 }
 0x1ba   :  { %v4999_v19 = vadd.f32 %v2539_v34, %v2527_v62 }
 0x1bf   :  { %v2528_v21 = vpop.f32.mrf.mxu3 }
 0x1c3   :  { %v2448_v29 = vpop.f32.mrf.mxu2 }
 0x1c4   :  { %v2449_v52 = vadd.f32 %v2448_v29, %v4983_v60  ;;  %v4730_v60 = vld [vmem:[%s5106_s5 + $0xf0] sm:$0xff] }
 0x1c5   :  { %2929 = vmatpush.bf16.msrb.mxu0 %v4730_v60 }
 0x1c9   :  { %2930 = vmatpush.bf16.msrb.mxu0 %v4729_v0 }
 0x1cb   :  { %v2450_v7 = vpop.f32.mrf.mxu2 }
 0x1cd   :  { %2931 = vmatpush.bf16.msrb.mxu0 %v4728_v3 }
 0x1cf   :  { %v2591_v43 = vpop.f32.mrf.mxu1 }
 0x1d1   :  { %2932 = vmatpush.bf16.msrb.mxu0 %v4727_v37 }
 0x1d3   :  { %v2500_v49 = vpop.f32.mrf.mxu2 }
 0x1d4   :  { %v2501_v4 = vadd.f32 %v2500_v49, %v4986_v13  ;;  %v4725_v13 = vld [vmem:[%s5106_s5 + $0xc8] sm:$0xff] }
 0x1d5   :  { %2933 = vmatpush.bf16.msrb.mxu0 %v4726_v11 }
 0x1d7   :  { %v2578_v39 = vpop.f32.mrf.mxu3  ;;  %v2593_v48 = vpop.f32.mrf.mxu1 }
 0x1d8   :  { %v2579_v40 = vadd.f32 %v2578_v39, %v1768_v32  ;;  %v4736_v32 = vld [vmem:[%s5107_s6] ss:$0 sm:$0xff] }
 0x1d9   :  { %2934 = vmatpush.bf16.msrb.mxu0 %v4725_v13 }
 0x1da   :  { %v5041_v16 = vadd.f32 %v2591_v43, %v2579_v40 }
 0x1db   :  { %v2502_v61 = vpop.f32.mrf.mxu2 }
 0x1dd   :  { %2935 = vmatpush.bf16.msrb.mxu0 %v4724_v15 }
 0x1df   :  { %v2580_v28 = vpop.f32.mrf.mxu3 }
 0x1e1   :  { %v2461_v25 = vpop.f32.mrf.mxu0 }
 0x1e2   :  { %v2462_v54 = vadd.f32 %v2461_v25, %v2449_v52 }
 0x1e4   :  { %v2621_v30 = vmax.f32 %v2462_v54, 0.0 }
 0x1e5   :  { %v2552_v58 = vpop.f32.mrf.mxu2 }
 0x1e6   :  { %v2625_v59 = vpack.c.bf16 %v2621_v30, %v2621_v30  ;;  %v2553_v14 = vadd.f32 %v2552_v58, %v4999_v19 }
 0x1e8   :  { %2897 = vmatmul.bf16.vlgmr.msrb.gmra.mxu3 %v2625_v59 }
 0x1e9   :  { %v2463_v63 = vpop.f32.mrf.mxu0 }
 0x1ed   :  { %v2554_v1 = vpop.f32.mrf.mxu2 }
 0x1f1   :  { %v2513_v5 = vpop.f32.mrf.mxu0 }
 0x1f2   :  { %v2514_v46 = vadd.f32 %v2513_v5, %v2501_v4 }
 0x1f4   :  { %v2622_v8 = vmax.f32 %v2514_v46, 0.0 }
 0x1f6   :  { %v2626_v9 = vpack.c.bf16 %v2622_v8, %v2622_v8 }
 0x1f8   :  { %2910 = vmatmul.bf16.vlgmr.msrb.gmra.mxu1 %v2626_v9 }
 0x1f9   :  { %v2515_v12 = vpop.f32.mrf.mxu0 }
 0x201   :  { %v2565_v55 = vpop.f32.mrf.mxu0 }
 0x202   :  { %v2566_v45 = vadd.f32 %v2565_v55, %v2553_v14 }
 0x204   :  { %v2623_v62 = vmax.f32 %v2566_v45, 0.0 }
 0x205   :  { %v2604_v17 = vpop.f32.mrf.mxu2 }
 0x206   :  { %v2627_v18 = vpack.c.bf16 %v2623_v62, %v2623_v62  ;;  %v2605_v21 = vadd.f32 %v2604_v17, %v5041_v16 }
 0x208   :  { %2923 = vmatmul.bf16.vlgmr.msrb.gmra.mxu2 %v2627_v18 }
 0x209   :  { %v2567_v34 = vpop.f32.mrf.mxu0 }
 0x20d   :  { %v2606_v20 = vpop.f32.mrf.mxu2 }
 0x221   :  { %v2617_v22 = vpop.f32.mrf.mxu0 }
 0x222   :  { %v2618_v23 = vadd.f32 %v2617_v22, %v2605_v21 }
 0x224   :  { %v2624_v24 = vmax.f32 %v2618_v23, 0.0 }
 0x226   :  { %v2628_v26 = vpack.c.bf16 %v2624_v24, %v2624_v24 }
 0x228   :  { %2936 = vmatmul.bf16.vlgmr.msrb.gmra.mxu0 %v2628_v26 }
 0x229   :  { %v2619_v19 = vpop.f32.mrf.mxu0 }
 0x26b   :  { %v2898_v27 = vpop.f32.mrf.mxu3 }
 0x26c   :  { %v2899_v33 = vadd.f32 %v4736_v32, %v2898_v27 }
 0x273   :  { %v2900_v51 = vpop.f32.mrf.mxu3 }
 0x275   :  { %v2911_v38 = vpop.f32.mrf.mxu1 }
 0x276   :  { %v2912_v36 = vadd.f32 %v2911_v38, %v2899_v33 }
 0x27d   :  { %v2913_v2 = vpop.f32.mrf.mxu1 }
 0x28b   :  { %v2924_v31 = vpop.f32.mrf.mxu2 }
 0x28c   :  { %v2925_v39 = vadd.f32 %v2924_v31, %v2912_v36 }
 0x293   :  { %v2926_v29 = vpop.f32.mrf.mxu2 }
 0x2a5   :  { %v2937_v40 = vpop.f32.mrf.mxu0 }
 0x2a6   :  { %v2938_v41 = vadd.f32 %v2937_v40, %v2925_v39 }
 0x2a8   :  { %2941 = vst [vmem:[%s5108_s7] sm:$0xff] %v2938_v41 }
 0x2ad   :  { %v2939_v42 = vpop.f32.mrf.mxu0 }
 0x2ae   :  { %2946 = vsyncpa [#allocation3], 1 }
 0x2af   :  { %2947 = vsyncpa [#allocation5], 1 }

</bundles_post_ra>
